<compile_context>
chip_gen: v7x
topology: tpu7x:2x2x1
jax: 0.10.0
libtpu: 0.0.40
codegen_flags: <defaults>
</compile_context>

<pallas_src>
import functools

import jax
import jax.numpy as jnp
from jax.experimental import pallas as pl
from jax.experimental.pallas import tpu as pltpu


# ----------------------------------------------------------------------------
# Helpers
# ----------------------------------------------------------------------------
def _round_up(v, m):
    return (v + m - 1) // m * m


def _choose_m_tile(M, max_tm=512):
    # Multiple of 16 (bf16 sublane packing); cap at 512 rows per tile.
    return min(max_tm, _round_up(max(M, 1), 16))


def _choose_k_tile(Kp, max_tk=1024):
    # Kp is a multiple of 128; pick the largest 128-multiple tile <= max_tk dividing Kp.
    if Kp <= max_tk:
        return Kp
    nblk = Kp // 128
    for t in range(max_tk // 128, 0, -1):
        if nblk % t == 0:
            return t * 128
    return 128


# ----------------------------------------------------------------------------
# Pallas kernel: tiled matmul + f32 accumulator + fused bias/ReLU on last K step
# ----------------------------------------------------------------------------
def _matmul_bias_act_kernel(x_ref, w_ref, b_ref, o_ref, acc_ref, *, apply_relu):
    @pl.when(pl.program_id(1) == 0)
    def _init():
        acc_ref[...] = jnp.zeros_like(acc_ref)

    acc_ref[...] += jnp.dot(
        x_ref[...], w_ref[...], preferred_element_type=jnp.float32
    )

    @pl.when(pl.program_id(1) == pl.num_programs(1) - 1)
    def _finalize():
        out = acc_ref[...] + b_ref[...]  # (TM, Np) + (1, Np)
        if apply_relu:
            out = jnp.maximum(out, 0.0)
        o_ref[...] = out.astype(o_ref.dtype)


def pallas_matmul_bias(x, w_packed, b_packed, *, n_out, apply_relu, out_dtype):
    """x: (M, K) bf16 (unpadded). w_packed: (Kp, Np) bf16. b_packed: (1, Np) f32.
    Returns (M, n_out) in `out_dtype`."""
    M, K = x.shape
    Kp, Np = w_packed.shape

    TM = _choose_m_tile(M)
    Mp = _round_up(M, TM)
    TK = _choose_k_tile(Kp)
    n_m, n_k = Mp // TM, Kp // TK

    if (Mp, Kp) != (M, K):
        xp = jnp.zeros((Mp, Kp), x.dtype).at[:M, :K].set(x)
    else:
        xp = x

    out = pl.pallas_call(
        functools.partial(_matmul_bias_act_kernel, apply_relu=apply_relu),
        out_shape=jax.ShapeDtypeStruct((Mp, Np), out_dtype),
        grid_spec=pltpu.PrefetchScalarGridSpec(
            num_scalar_prefetch=0,
            grid=(n_m, n_k),
            in_specs=[
                pl.BlockSpec((TM, TK), lambda i, k: (i, k)),
                pl.BlockSpec((TK, Np), lambda i, k: (k, 0)),
                pl.BlockSpec((1, Np), lambda i, k: (0, 0)),
            ],
            out_specs=pl.BlockSpec((TM, Np), lambda i, k: (i, 0)),
            scratch_shapes=[pltpu.VMEM((TM, Np), jnp.float32)],
        ),
        compiler_params=pltpu.CompilerParams(
            dimension_semantics=("parallel", "arbitrary"),
            vmem_limit_bytes=32 * 1024 * 1024,
        ),
    )(xp, w_packed, b_packed)

    if (Mp, Np) != (M, n_out):
        out = out[:M, :n_out]
    return out


# ----------------------------------------------------------------------------
# Conv2d(+ReLU) = im2col (glue, bf16) + Pallas matmul kernel (hot path)
# ----------------------------------------------------------------------------
def conv2d_im2col(x_nhwc, w_packed, b_packed, *, kh, kw, cout, stride, padding,
                  apply_relu=True, out_dtype=jnp.bfloat16):
    N, H, W, Cin = x_nhwc.shape
    xpad = jnp.pad(x_nhwc, ((0, 0), (padding, padding), (padding, padding), (0, 0)))
    Ho = (H + 2 * padding - kh) // stride + 1
    Wo = (W + 2 * padding - kw) // stride + 1

    cols = []
    for i in range(kh):
        for j in range(kw):
            cols.append(xpad[:, i:i + stride * Ho:stride, j:j + stride * Wo:stride, :])
    # (N, Ho, Wo, kh*kw, Cin) -> (M, kh*kw*Cin); K index = (i*kw + j)*Cin + c
    patches = jnp.stack(cols, axis=3).reshape(N * Ho * Wo, kh * kw * Cin)

    out = pallas_matmul_bias(patches, w_packed, b_packed, n_out=cout,
                             apply_relu=apply_relu, out_dtype=out_dtype)
    return out.reshape(N, Ho, Wo, cout)


# ----------------------------------------------------------------------------
# Parameters (PyTorch-default-style uniform init) + one-time packing
# ----------------------------------------------------------------------------
def init_params(key):
    ks = jax.random.split(key, 12)

    def conv_init(kw_, kb_, cout, cin, kh, kw):
        fan_in = cin * kh * kw
        bound = 1.0 / jnp.sqrt(fan_in)
        w = jax.random.uniform(kw_, (cout, cin, kh, kw), jnp.float32, -bound, bound)
        b = jax.random.uniform(kb_, (cout,), jnp.float32, -bound, bound)
        return w, b

    p = {}
    p["w1"], p["b1"] = conv_init(ks[0], ks[1], 8, 1, 3, 3)
    p["w2"], p["b2"] = conv_init(ks[2], ks[3], 16, 8, 3, 3)
    p["w3"], p["b3"] = conv_init(ks[4], ks[5], 32, 16, 3, 3)
    p["w4"], p["b4"] = conv_init(ks[6], ks[7], 64, 32, 3, 3)
    p["w5"], p["b5"] = conv_init(ks[8], ks[9], 128, 64, 7, 7)
    bound = 1.0 / jnp.sqrt(128.0)
    p["wd"] = jax.random.uniform(ks[10], (10, 128), jnp.float32, -bound, bound)
    p["bd"] = jax.random.uniform(ks[11], (10,), jnp.float32, -bound, bound)
    return p


def _pack_matmul(wmat, b):
    """wmat: (K, N) f32, b: (N,) f32 -> ((Kp, Np) bf16, (1, Np) f32), zero-padded."""
    K, N = wmat.shape
    Kp, Np = _round_up(K, 128), _round_up(N, 128)
    wp = jnp.zeros((Kp, Np), jnp.bfloat16).at[:K, :N].set(wmat.astype(jnp.bfloat16))
    bp = jnp.zeros((1, Np), jnp.float32).at[0, :N].set(b)
    return wp, bp


def pack_params(p):
    """One-time: im2col weight layout (W[o,c,i,j] -> W_mat[(i*kw+j)*Cin+c, o]),
    bf16 cast, zero-pad to MXU-friendly (Kp, Np)."""
    packed = {}
    for name in ("1", "2", "3", "4", "5"):
        w, b = p["w" + name], p["b" + name]
        cout, cin, kh, kw = w.shape
        wmat = jnp.transpose(w, (2, 3, 1, 0)).reshape(kh * kw * cin, cout)
        packed["w" + name], packed["b" + name] = _pack_matmul(wmat, b)
    packed["wd"], packed["bd"] = _pack_matmul(p["wd"].T, p["bd"])
    return packed


# ----------------------------------------------------------------------------
# Forward pass (Pallas) and numerically-matched pure-JAX reference
# ----------------------------------------------------------------------------
@jax.jit
def simple_cnn_forward(packed, x_nchw):
    x = jnp.transpose(x_nchw, (0, 2, 3, 1)).astype(jnp.bfloat16)  # NCHW -> NHWC, bf16
    # TODO(synk): conv1 (K=9, Cout=8) still pads to a mostly-zero 128-wide MXU tile; a
    # fully fused single-kernel network (activations resident in VMEM, grid over batch)
    # would remove that waste plus all inter-layer HBM round trips.
    x = conv2d_im2col(x, packed["w1"], packed["b1"], kh=3, kw=3, cout=8, stride=1, padding=1)    # (N,28,28,8)
    x = conv2d_im2col(x, packed["w2"], packed["b2"], kh=3, kw=3, cout=16, stride=1, padding=1)   # (N,28,28,16)
    x = conv2d_im2col(x, packed["w3"], packed["b3"], kh=3, kw=3, cout=32, stride=2, padding=1)   # (N,14,14,32)
    x = conv2d_im2col(x, packed["w4"], packed["b4"], kh=3, kw=3, cout=64, stride=2, padding=1)   # (N,7,7,64)
    x = conv2d_im2col(x, packed["w5"], packed["b5"], kh=7, kw=7, cout=128, stride=1, padding=0)  # (N,1,1,128)
    x = x.reshape(x.shape[0], 128)  # 1x1 spatial -> same flatten order as NCHW
    return pallas_matmul_bias(x, packed["wd"], packed["bd"], n_out=10,
                              apply_relu=False, out_dtype=jnp.float32)


@jax.jit
def reference_forward(params, x_nchw):
    # Same numerics as the Pallas path: bf16 operands, f32 accumulation, f32 bias+ReLU,
    # bf16 activation storage.
    def conv(x, w, b, stride, pad):
        y = jax.lax.conv_general_dilated(
            x, w.astype(jnp.bfloat16), (stride, stride), [(pad, pad), (pad, pad)],
            dimension_numbers=("NCHW", "OIHW", "NCHW"),
            preferred_element_type=jnp.float32,
        )
        return jax.nn.relu(y + b[None, :, None, None]).astype(jnp.bfloat16)

    x = x_nchw.astype(jnp.bfloat16)
    x = conv(x, params["w1"], params["b1"], 1, 1)
    x = conv(x, params["w2"], params["b2"], 1, 1)
    x = conv(x, params["w3"], params["b3"], 2, 1)
    x = conv(x, params["w4"], params["b4"], 2, 1)
    x = conv(x, params["w5"], params["b5"], 1, 0)
    x = x.reshape(x.shape[0], -1)
    return jnp.dot(x, params["wd"].T.astype(jnp.bfloat16),
                   preferred_element_type=jnp.float32) + params["bd"]


if __name__ == "__main__":
    key = jax.random.PRNGKey(0)
    k_param, k_x = jax.random.split(key)
    params = init_params(k_param)
    packed = pack_params(params)          # one-time weight packing (not per forward)
    x = jax.random.normal(k_x, (2, 1, 28, 28), jnp.float32)  # NCHW, like PyTorch

    out = jax.block_until_ready(simple_cnn_forward(packed, x))
    assert out.shape == (2, 10), out.shape

    ref = jax.block_until_ready(reference_forward(params, x))
    max_err = float(jnp.max(jnp.abs(out - ref)))
    assert jnp.allclose(out, ref, rtol=2e-2, atol=2e-2), max_err

    print("KERNEL_OK")
</pallas_src>

<mosaic_0001>
module attributes {stable_mosaic.version = 11 : i64} {
  func.func @_matmul_bias_act_kernel(%arg0: i32, %arg1: i32, %arg2: memref<512x128xbf16, #tpu.memory_space<vmem>>, %arg3: memref<128x128xbf16, #tpu.memory_space<vmem>>, %arg4: memref<1x128xf32, #tpu.memory_space<vmem>>, %arg5: memref<512x128xbf16, #tpu.memory_space<vmem>>, %arg6: memref<512x128xf32, #tpu.memory_space<vmem>>) attributes {dimension_semantics = [#tpu.dimension_semantics<parallel>, #tpu.dimension_semantics<arbitrary>], iteration_bounds = array<i64: 4, 1>, scalar_prefetch = 0 : i64, scratch_operands = 1 : i64, tpu.core_type = #tpu.core_type<tc>, window_params = [{transform_indices = @transform_0, window_bounds = array<i64: 512, 128>}, {transform_indices = @transform_1, window_bounds = array<i64: 128, 128>}, {pipeline_mode = #tpu.pipeline_mode<synchronous>, transform_indices = @transform_2, window_bounds = array<i64: 1, 128>}, {transform_indices = @transform_3, window_bounds = array<i64: 512, 128>}]} {
    %c0_i32 = arith.constant 0 : i32
    %0 = arith.cmpi eq, %arg1, %c0_i32 : i32
    %1 = arith.extui %0 : i1 to i32
    %c0_i32_0 = arith.constant 0 : i32
    %2 = arith.cmpi ne, %1, %c0_i32_0 : i32
    scf.if %2 {
      %cst_10 = arith.constant 0.000000e+00 : f32
      %12 = vector.broadcast %cst_10 : f32 to vector<512x128xf32>
      %c0_11 = arith.constant 0 : index
      %c0_12 = arith.constant 0 : index
      %13 = vector.load %arg6[%c0_11, %c0_12] : memref<512x128xf32, #tpu.memory_space<vmem>>, vector<512x128xf32>
      tpu.vector_store %arg6[%c0_11, %c0_12], %12 {strides = array<i32>} : memref<512x128xf32, #tpu.memory_space<vmem>>, vector<512x128xf32>,
    } else {
    }
    %c0 = arith.constant 0 : index
    %c0_1 = arith.constant 0 : index
    %3 = vector.load %arg6[%c0, %c0_1] : memref<512x128xf32, #tpu.memory_space<vmem>>, vector<512x128xf32>
    %c0_2 = arith.constant 0 : index
    %c0_3 = arith.constant 0 : index
    %4 = vector.load %arg2[%c0_2, %c0_3] : memref<512x128xbf16, #tpu.memory_space<vmem>>, vector<512x128xbf16>
    %c0_4 = arith.constant 0 : index
    %c0_5 = arith.constant 0 : index
    %5 = vector.load %arg3[%c0_4, %c0_5] : memref<128x128xbf16, #tpu.memory_space<vmem>>, vector<128x128xbf16>
    %cst = arith.constant dense<0.000000e+00> : vector<512x128xf32>
    %6 = tpu.matmul %4, %5, %cst {dimension_numbers = #tpu.dot_dimension_numbers<[1], [0], [0], [1], [0, 0, 1, 1], [], []>} : vector<512x128xbf16>, vector<128x128xbf16>, vector<512x128xf32> -> vector<512x128xf32>
    %7 = arith.addf %3, %6 : vector<512x128xf32>
    %c0_6 = arith.constant 0 : index
    %c0_7 = arith.constant 0 : index
    %8 = vector.load %arg6[%c0_6, %c0_7] : memref<512x128xf32, #tpu.memory_space<vmem>>, vector<512x128xf32>
    tpu.vector_store %arg6[%c0_6, %c0_7], %7 {strides = array<i32>} : memref<512x128xf32, #tpu.memory_space<vmem>>, vector<512x128xf32>,
    %c0_i32_8 = arith.constant 0 : i32
    %9 = arith.cmpi eq, %arg1, %c0_i32_8 : i32
    %10 = arith.extui %9 : i1 to i32
    %c0_i32_9 = arith.constant 0 : i32
    %11 = arith.cmpi ne, %10, %c0_i32_9 : i32
    scf.if %11 {
      %c0_10 = arith.constant 0 : index
      %c0_11 = arith.constant 0 : index
      %12 = vector.load %arg6[%c0_10, %c0_11] : memref<512x128xf32, #tpu.memory_space<vmem>>, vector<512x128xf32>
      %c0_12 = arith.constant 0 : index
      %c0_13 = arith.constant 0 : index
      %13 = vector.load %arg4[%c0_12, %c0_13] : memref<1x128xf32, #tpu.memory_space<vmem>>, vector<1x128xf32>
      %14 = vector.broadcast %13 : vector<1x128xf32> to vector<512x128xf32>
      %15 = arith.addf %12, %14 : vector<512x128xf32>
      %cst_14 = arith.constant 0.000000e+00 : f32
      %16 = vector.broadcast %cst_14 : f32 to vector<512x128xf32>
      %17 = arith.maximumf %15, %16 : vector<512x128xf32>
      %18 = arith.truncf %17 : vector<512x128xf32> to vector<512x128xbf16>
      %c0_15 = arith.constant 0 : index
      %c0_16 = arith.constant 0 : index
      %19 = vector.load %arg5[%c0_15, %c0_16] : memref<512x128xbf16, #tpu.memory_space<vmem>>, vector<512x128xbf16>
      tpu.vector_store %arg5[%c0_15, %c0_16], %18 {strides = array<i32>} : memref<512x128xbf16, #tpu.memory_space<vmem>>, vector<512x128xbf16>,
    } else {
    }
    return
  }
  func.func @transform_0(%arg0: i32, %arg1: i32) -> (i32, i32) {
    %c0_i32 = arith.constant 0 : i32
    return %arg0, %arg1 : i32, i32
  }
  func.func @transform_1(%arg0: i32, %arg1: i32) -> (i32, i32) {
    %c0_i32 = arith.constant 0 : i32
    %c0_i32_0 = arith.constant 0 : i32
    return %arg1, %c0_i32 : i32, i32
  }
  func.func @transform_2(%arg0: i32, %arg1: i32) -> (i32, i32) {
    %c0_i32 = arith.constant 0 : i32
    %c0_i32_0 = arith.constant 0 : i32
    %c0_i32_1 = arith.constant 0 : i32
    return %c0_i32, %c0_i32_0 : i32, i32
  }
  func.func @transform_3(%arg0: i32, %arg1: i32) -> (i32, i32) {
    %c0_i32 = arith.constant 0 : i32
    %c0_i32_0 = arith.constant 0 : i32
    return %arg0, %c0_i32 : i32, i32
  }
}

module attributes {stable_mosaic.version = 11 : i64} {
  func.func @_matmul_bias_act_kernel(%arg0: i32, %arg1: i32, %arg2: memref<400x256xbf16, #tpu.memory_space<vmem>>, %arg3: memref<256x128xbf16, #tpu.memory_space<vmem>>, %arg4: memref<1x128xf32, #tpu.memory_space<vmem>>, %arg5: memref<400x128xbf16, #tpu.memory_space<vmem>>, %arg6: memref<400x128xf32, #tpu.memory_space<vmem>>) attributes {dimension_semantics = [#tpu.dimension_semantics<parallel>, #tpu.dimension_semantics<arbitrary>], iteration_bounds = array<i64: 1, 1>, scalar_prefetch = 0 : i64, scratch_operands = 1 : i64, tpu.core_type = #tpu.core_type<tc>, window_params = [{transform_indices = @transform_0, window_bounds = array<i64: 400, 256>}, {transform_indices = @transform_1, window_bounds = array<i64: 256, 128>}, {pipeline_mode = #tpu.pipeline_mode<synchronous>, transform_indices = @transform_2, window_bounds = array<i64: 1, 128>}, {transform_indices = @transform_3, window_bounds = array<i64: 400, 128>}]} {
    %c0_i32 = arith.constant 0 : i32
    %0 = arith.cmpi eq, %arg1, %c0_i32 : i32
    %1 = arith.extui %0 : i1 to i32
    %c0_i32_0 = arith.constant 0 : i32
    %2 = arith.cmpi ne, %1, %c0_i32_0 : i32
    scf.if %2 {
      %cst_10 = arith.constant 0.000000e+00 : f32
      %12 = vector.broadcast %cst_10 : f32 to vector<400x128xf32>
      %c0_11 = arith.constant 0 : index
      %c0_12 = arith.constant 0 : index
      %13 = vector.load %arg6[%c0_11, %c0_12] : memref<400x128xf32, #tpu.memory_space<vmem>>, vector<400x128xf32>
      tpu.vector_store %arg6[%c0_11, %c0_12], %12 {strides = array<i32>} : memref<400x128xf32, #tpu.memory_space<vmem>>, vector<400x128xf32>,
    } else {
    }
    %c0 = arith.constant 0 : index
    %c0_1 = arith.constant 0 : index
    %3 = vector.load %arg6[%c0, %c0_1] : memref<400x128xf32, #tpu.memory_space<vmem>>, vector<400x128xf32>
    %c0_2 = arith.constant 0 : index
    %c0_3 = arith.constant 0 : index
    %4 = vector.load %arg2[%c0_2, %c0_3] : memref<400x256xbf16, #tpu.memory_space<vmem>>, vector<400x256xbf16>
    %c0_4 = arith.constant 0 : index
    %c0_5 = arith.constant 0 : index
    %5 = vector.load %arg3[%c0_4, %c0_5] : memref<256x128xbf16, #tpu.memory_space<vmem>>, vector<256x128xbf16>
    %cst = arith.constant dense<0.000000e+00> : vector<400x128xf32>
    %6 = tpu.matmul %4, %5, %cst {dimension_numbers = #tpu.dot_dimension_numbers<[1], [0], [0], [1], [0, 0, 1, 1], [], []>} : vector<400x256xbf16>, vector<256x128xbf16>, vector<400x128xf32> -> vector<400x128xf32>
    %7 = arith.addf %3, %6 : vector<400x128xf32>
    %c0_6 = arith.constant 0 : index
    %c0_7 = arith.constant 0 : index
    %8 = vector.load %arg6[%c0_6, %c0_7] : memref<400x128xf32, #tpu.memory_space<vmem>>, vector<400x128xf32>
    tpu.vector_store %arg6[%c0_6, %c0_7], %7 {strides = array<i32>} : memref<400x128xf32, #tpu.memory_space<vmem>>, vector<400x128xf32>,
    %c0_i32_8 = arith.constant 0 : i32
    %9 = arith.cmpi eq, %arg1, %c0_i32_8 : i32
    %10 = arith.extui %9 : i1 to i32
    %c0_i32_9 = arith.constant 0 : i32
    %11 = arith.cmpi ne, %10, %c0_i32_9 : i32
    scf.if %11 {
      %c0_10 = arith.constant 0 : index
      %c0_11 = arith.constant 0 : index
      %12 = vector.load %arg6[%c0_10, %c0_11] : memref<400x128xf32, #tpu.memory_space<vmem>>, vector<400x128xf32>
      %c0_12 = arith.constant 0 : index
      %c0_13 = arith.constant 0 : index
      %13 = vector.load %arg4[%c0_12, %c0_13] : memref<1x128xf32, #tpu.memory_space<vmem>>, vector<1x128xf32>
      %14 = vector.broadcast %13 : vector<1x128xf32> to vector<400x128xf32>
      %15 = arith.addf %12, %14 : vector<400x128xf32>
      %cst_14 = arith.constant 0.000000e+00 : f32
      %16 = vector.broadcast %cst_14 : f32 to vector<400x128xf32>
      %17 = arith.maximumf %15, %16 : vector<400x128xf32>
      %18 = arith.truncf %17 : vector<400x128xf32> to vector<400x128xbf16>
      %c0_15 = arith.constant 0 : index
      %c0_16 = arith.constant 0 : index
      %19 = vector.load %arg5[%c0_15, %c0_16] : memref<400x128xbf16, #tpu.memory_space<vmem>>, vector<400x128xbf16>
      tpu.vector_store %arg5[%c0_15, %c0_16], %18 {strides = array<i32>} : memref<400x128xbf16, #tpu.memory_space<vmem>>, vector<400x128xbf16>,
    } else {
    }
    return
  }
  func.func @transform_0(%arg0: i32, %arg1: i32) -> (i32, i32) {
    %c0_i32 = arith.constant 0 : i32
    return %arg0, %arg1 : i32, i32
  }
  func.func @transform_1(%arg0: i32, %arg1: i32) -> (i32, i32) {
    %c0_i32 = arith.constant 0 : i32
    %c0_i32_0 = arith.constant 0 : i32
    return %arg1, %c0_i32 : i32, i32
  }
  func.func @transform_2(%arg0: i32, %arg1: i32) -> (i32, i32) {
    %c0_i32 = arith.constant 0 : i32
    %c0_i32_0 = arith.constant 0 : i32
    %c0_i32_1 = arith.constant 0 : i32
    return %c0_i32, %c0_i32_0 : i32, i32
  }
  func.func @transform_3(%arg0: i32, %arg1: i32) -> (i32, i32) {
    %c0_i32 = arith.constant 0 : i32
    %c0_i32_0 = arith.constant 0 : i32
    return %arg0, %c0_i32 : i32, i32
  }
}

module attributes {stable_mosaic.version = 11 : i64} {
  func.func @_matmul_bias_act_kernel(%arg0: i32, %arg1: i32, %arg2: memref<112x384xbf16, #tpu.memory_space<vmem>>, %arg3: memref<384x128xbf16, #tpu.memory_space<vmem>>, %arg4: memref<1x128xf32, #tpu.memory_space<vmem>>, %arg5: memref<112x128xbf16, #tpu.memory_space<vmem>>, %arg6: memref<112x128xf32, #tpu.memory_space<vmem>>) attributes {dimension_semantics = [#tpu.dimension_semantics<parallel>, #tpu.dimension_semantics<arbitrary>], iteration_bounds = array<i64: 1, 1>, scalar_prefetch = 0 : i64, scratch_operands = 1 : i64, tpu.core_type = #tpu.core_type<tc>, window_params = [{transform_indices = @transform_0, window_bounds = array<i64: 112, 384>}, {transform_indices = @transform_1, window_bounds = array<i64: 384, 128>}, {pipeline_mode = #tpu.pipeline_mode<synchronous>, transform_indices = @transform_2, window_bounds = array<i64: 1, 128>}, {transform_indices = @transform_3, window_bounds = array<i64: 112, 128>}]} {
    %c0_i32 = arith.constant 0 : i32
    %0 = arith.cmpi eq, %arg1, %c0_i32 : i32
    %1 = arith.extui %0 : i1 to i32
    %c0_i32_0 = arith.constant 0 : i32
    %2 = arith.cmpi ne, %1, %c0_i32_0 : i32
    scf.if %2 {
      %cst_10 = arith.constant 0.000000e+00 : f32
      %12 = vector.broadcast %cst_10 : f32 to vector<112x128xf32>
      %c0_11 = arith.constant 0 : index
      %c0_12 = arith.constant 0 : index
      %13 = vector.load %arg6[%c0_11, %c0_12] : memref<112x128xf32, #tpu.memory_space<vmem>>, vector<112x128xf32>
      tpu.vector_store %arg6[%c0_11, %c0_12], %12 {strides = array<i32>} : memref<112x128xf32, #tpu.memory_space<vmem>>, vector<112x128xf32>,
    } else {
    }
    %c0 = arith.constant 0 : index
    %c0_1 = arith.constant 0 : index
    %3 = vector.load %arg6[%c0, %c0_1] : memref<112x128xf32, #tpu.memory_space<vmem>>, vector<112x128xf32>
    %c0_2 = arith.constant 0 : index
    %c0_3 = arith.constant 0 : index
    %4 = vector.load %arg2[%c0_2, %c0_3] : memref<112x384xbf16, #tpu.memory_space<vmem>>, vector<112x384xbf16>
    %c0_4 = arith.constant 0 : index
    %c0_5 = arith.constant 0 : index
    %5 = vector.load %arg3[%c0_4, %c0_5] : memref<384x128xbf16, #tpu.memory_space<vmem>>, vector<384x128xbf16>
    %cst = arith.constant dense<0.000000e+00> : vector<112x128xf32>
    %6 = tpu.matmul %4, %5, %cst {dimension_numbers = #tpu.dot_dimension_numbers<[1], [0], [0], [1], [0, 0, 1, 1], [], []>} : vector<112x384xbf16>, vector<384x128xbf16>, vector<112x128xf32> -> vector<112x128xf32>
    %7 = arith.addf %3, %6 : vector<112x128xf32>
    %c0_6 = arith.constant 0 : index
    %c0_7 = arith.constant 0 : index
    %8 = vector.load %arg6[%c0_6, %c0_7] : memref<112x128xf32, #tpu.memory_space<vmem>>, vector<112x128xf32>
    tpu.vector_store %arg6[%c0_6, %c0_7], %7 {strides = array<i32>} : memref<112x128xf32, #tpu.memory_space<vmem>>, vector<112x128xf32>,
    %c0_i32_8 = arith.constant 0 : i32
    %9 = arith.cmpi eq, %arg1, %c0_i32_8 : i32
    %10 = arith.extui %9 : i1 to i32
    %c0_i32_9 = arith.constant 0 : i32
    %11 = arith.cmpi ne, %10, %c0_i32_9 : i32
    scf.if %11 {
      %c0_10 = arith.constant 0 : index
      %c0_11 = arith.constant 0 : index
      %12 = vector.load %arg6[%c0_10, %c0_11] : memref<112x128xf32, #tpu.memory_space<vmem>>, vector<112x128xf32>
      %c0_12 = arith.constant 0 : index
      %c0_13 = arith.constant 0 : index
      %13 = vector.load %arg4[%c0_12, %c0_13] : memref<1x128xf32, #tpu.memory_space<vmem>>, vector<1x128xf32>
      %14 = vector.broadcast %13 : vector<1x128xf32> to vector<112x128xf32>
      %15 = arith.addf %12, %14 : vector<112x128xf32>
      %cst_14 = arith.constant 0.000000e+00 : f32
      %16 = vector.broadcast %cst_14 : f32 to vector<112x128xf32>
      %17 = arith.maximumf %15, %16 : vector<112x128xf32>
      %18 = arith.truncf %17 : vector<112x128xf32> to vector<112x128xbf16>
      %c0_15 = arith.constant 0 : index
      %c0_16 = arith.constant 0 : index
      %19 = vector.load %arg5[%c0_15, %c0_16] : memref<112x128xbf16, #tpu.memory_space<vmem>>, vector<112x128xbf16>
      tpu.vector_store %arg5[%c0_15, %c0_16], %18 {strides = array<i32>} : memref<112x128xbf16, #tpu.memory_space<vmem>>, vector<112x128xbf16>,
    } else {
    }
    return
  }
  func.func @transform_0(%arg0: i32, %arg1: i32) -> (i32, i32) {
    %c0_i32 = arith.constant 0 : i32
    return %arg0, %arg1 : i32, i32
  }
  func.func @transform_1(%arg0: i32, %arg1: i32) -> (i32, i32) {
    %c0_i32 = arith.constant 0 : i32
    %c0_i32_0 = arith.constant 0 : i32
    return %arg1, %c0_i32 : i32, i32
  }
  func.func @transform_2(%arg0: i32, %arg1: i32) -> (i32, i32) {
    %c0_i32 = arith.constant 0 : i32
    %c0_i32_0 = arith.constant 0 : i32
    %c0_i32_1 = arith.constant 0 : i32
    return %c0_i32, %c0_i32_0 : i32, i32
  }
  func.func @transform_3(%arg0: i32, %arg1: i32) -> (i32, i32) {
    %c0_i32 = arith.constant 0 : i32
    %c0_i32_0 = arith.constant 0 : i32
    return %arg0, %c0_i32 : i32, i32
  }
}

module attributes {stable_mosaic.version = 11 : i64} {
  func.func @_matmul_bias_act_kernel(%arg0: i32, %arg1: i32, %arg2: memref<16x640xbf16, #tpu.memory_space<vmem>>, %arg3: memref<640x128xbf16, #tpu.memory_space<vmem>>, %arg4: memref<1x128xf32, #tpu.memory_space<vmem>>, %arg5: memref<16x128xbf16, #tpu.memory_space<vmem>>, %arg6: memref<16x128xf32, #tpu.memory_space<vmem>>) attributes {dimension_semantics = [#tpu.dimension_semantics<parallel>, #tpu.dimension_semantics<arbitrary>], iteration_bounds = array<i64: 1, 5>, scalar_prefetch = 0 : i64, scratch_operands = 1 : i64, tpu.core_type = #tpu.core_type<tc>, window_params = [{transform_indices = @transform_0, window_bounds = array<i64: 16, 640>}, {transform_indices = @transform_1, window_bounds = array<i64: 640, 128>}, {pipeline_mode = #tpu.pipeline_mode<synchronous>, transform_indices = @transform_2, window_bounds = array<i64: 1, 128>}, {transform_indices = @transform_3, window_bounds = array<i64: 16, 128>}]} {
    %c0_i32 = arith.constant 0 : i32
    %0 = arith.cmpi eq, %arg1, %c0_i32 : i32
    %1 = arith.extui %0 : i1 to i32
    %c0_i32_0 = arith.constant 0 : i32
    %2 = arith.cmpi ne, %1, %c0_i32_0 : i32
    scf.if %2 {
      %cst_9 = arith.constant 0.000000e+00 : f32
      %12 = vector.broadcast %cst_9 : f32 to vector<16x128xf32>
      %c0_10 = arith.constant 0 : index
      %c0_11 = arith.constant 0 : index
      %13 = vector.load %arg6[%c0_10, %c0_11] : memref<16x128xf32, #tpu.memory_space<vmem>>, vector<16x128xf32>
      tpu.vector_store %arg6[%c0_10, %c0_11], %12 {strides = array<i32>} : memref<16x128xf32, #tpu.memory_space<vmem>>, vector<16x128xf32>,
    } else {
    }
    %c0 = arith.constant 0 : index
    %c0_1 = arith.constant 0 : index
    %3 = vector.load %arg6[%c0, %c0_1] : memref<16x128xf32, #tpu.memory_space<vmem>>, vector<16x128xf32>
    %c0_2 = arith.constant 0 : index
    %c0_3 = arith.constant 0 : index
    %4 = vector.load %arg2[%c0_2, %c0_3] : memref<16x640xbf16, #tpu.memory_space<vmem>>, vector<16x640xbf16>
    %c0_4 = arith.constant 0 : index
    %c0_5 = arith.constant 0 : index
    %5 = vector.load %arg3[%c0_4, %c0_5] : memref<640x128xbf16, #tpu.memory_space<vmem>>, vector<640x128xbf16>
    %cst = arith.constant dense<0.000000e+00> : vector<16x128xf32>
    %6 = tpu.matmul %4, %5, %cst {dimension_numbers = #tpu.dot_dimension_numbers<[1], [0], [0], [1], [0, 0, 1, 1], [], []>} : vector<16x640xbf16>, vector<640x128xbf16>, vector<16x128xf32> -> vector<16x128xf32>
    %7 = arith.addf %3, %6 : vector<16x128xf32>
    %c0_6 = arith.constant 0 : index
    %c0_7 = arith.constant 0 : index
    %8 = vector.load %arg6[%c0_6, %c0_7] : memref<16x128xf32, #tpu.memory_space<vmem>>, vector<16x128xf32>
    tpu.vector_store %arg6[%c0_6, %c0_7], %7 {strides = array<i32>} : memref<16x128xf32, #tpu.memory_space<vmem>>, vector<16x128xf32>,
    %c4_i32 = arith.constant 4 : i32
    %9 = arith.cmpi eq, %arg1, %c4_i32 : i32
    %10 = arith.extui %9 : i1 to i32
    %c0_i32_8 = arith.constant 0 : i32
    %11 = arith.cmpi ne, %10, %c0_i32_8 : i32
    scf.if %11 {
      %c0_9 = arith.constant 0 : index
      %c0_10 = arith.constant 0 : index
      %12 = vector.load %arg6[%c0_9, %c0_10] : memref<16x128xf32, #tpu.memory_space<vmem>>, vector<16x128xf32>
      %c0_11 = arith.constant 0 : index
      %c0_12 = arith.constant 0 : index
      %13 = vector.load %arg4[%c0_11, %c0_12] : memref<1x128xf32, #tpu.memory_space<vmem>>, vector<1x128xf32>
      %14 = vector.broadcast %13 : vector<1x128xf32> to vector<16x128xf32>
      %15 = arith.addf %12, %14 : vector<16x128xf32>
      %cst_13 = arith.constant 0.000000e+00 : f32
      %16 = vector.broadcast %cst_13 : f32 to vector<16x128xf32>
      %17 = arith.maximumf %15, %16 : vector<16x128xf32>
      %18 = arith.truncf %17 : vector<16x128xf32> to vector<16x128xbf16>
      %c0_14 = arith.constant 0 : index
      %c0_15 = arith.constant 0 : index
      %19 = vector.load %arg5[%c0_14, %c0_15] : memref<16x128xbf16, #tpu.memory_space<vmem>>, vector<16x128xbf16>
      tpu.vector_store %arg5[%c0_14, %c0_15], %18 {strides = array<i32>} : memref<16x128xbf16, #tpu.memory_space<vmem>>, vector<16x128xbf16>,
    } else {
    }
    return
  }
  func.func @transform_0(%arg0: i32, %arg1: i32) -> (i32, i32) {
    %c0_i32 = arith.constant 0 : i32
    return %arg0, %arg1 : i32, i32
  }
  func.func @transform_1(%arg0: i32, %arg1: i32) -> (i32, i32) {
    %c0_i32 = arith.constant 0 : i32
    %c0_i32_0 = arith.constant 0 : i32
    return %arg1, %c0_i32 : i32, i32
  }
  func.func @transform_2(%arg0: i32, %arg1: i32) -> (i32, i32) {
    %c0_i32 = arith.constant 0 : i32
    %c0_i32_0 = arith.constant 0 : i32
    %c0_i32_1 = arith.constant 0 : i32
    return %c0_i32, %c0_i32_0 : i32, i32
  }
  func.func @transform_3(%arg0: i32, %arg1: i32) -> (i32, i32) {
    %c0_i32 = arith.constant 0 : i32
    %c0_i32_0 = arith.constant 0 : i32
    return %arg0, %c0_i32 : i32, i32
  }
}

module attributes {stable_mosaic.version = 11 : i64} {
  func.func @_matmul_bias_act_kernel(%arg0: i32, %arg1: i32, %arg2: memref<16x128xbf16, #tpu.memory_space<vmem>>, %arg3: memref<128x128xbf16, #tpu.memory_space<vmem>>, %arg4: memref<1x128xf32, #tpu.memory_space<vmem>>, %arg5: memref<16x128xf32, #tpu.memory_space<vmem>>, %arg6: memref<16x128xf32, #tpu.memory_space<vmem>>) attributes {dimension_semantics = [#tpu.dimension_semantics<parallel>, #tpu.dimension_semantics<arbitrary>], iteration_bounds = array<i64: 1, 1>, scalar_prefetch = 0 : i64, scratch_operands = 1 : i64, tpu.core_type = #tpu.core_type<tc>, window_params = [{transform_indices = @transform_0, window_bounds = array<i64: 16, 128>}, {transform_indices = @transform_1, window_bounds = array<i64: 128, 128>}, {pipeline_mode = #tpu.pipeline_mode<synchronous>, transform_indices = @transform_2, window_bounds = array<i64: 1, 128>}, {transform_indices = @transform_3, window_bounds = array<i64: 16, 128>}]} {
    %c0_i32 = arith.constant 0 : i32
    %0 = arith.cmpi eq, %arg1, %c0_i32 : i32
    %1 = arith.extui %0 : i1 to i32
    %c0_i32_0 = arith.constant 0 : i32
    %2 = arith.cmpi ne, %1, %c0_i32_0 : i32
    scf.if %2 {
      %cst_10 = arith.constant 0.000000e+00 : f32
      %12 = vector.broadcast %cst_10 : f32 to vector<16x128xf32>
      %c0_11 = arith.constant 0 : index
      %c0_12 = arith.constant 0 : index
      %13 = vector.load %arg6[%c0_11, %c0_12] : memref<16x128xf32, #tpu.memory_space<vmem>>, vector<16x128xf32>
      tpu.vector_store %arg6[%c0_11, %c0_12], %12 {strides = array<i32>} : memref<16x128xf32, #tpu.memory_space<vmem>>, vector<16x128xf32>,
    } else {
    }
    %c0 = arith.constant 0 : index
    %c0_1 = arith.constant 0 : index
    %3 = vector.load %arg6[%c0, %c0_1] : memref<16x128xf32, #tpu.memory_space<vmem>>, vector<16x128xf32>
    %c0_2 = arith.constant 0 : index
    %c0_3 = arith.constant 0 : index
    %4 = vector.load %arg2[%c0_2, %c0_3] : memref<16x128xbf16, #tpu.memory_space<vmem>>, vector<16x128xbf16>
    %c0_4 = arith.constant 0 : index
    %c0_5 = arith.constant 0 : index
    %5 = vector.load %arg3[%c0_4, %c0_5] : memref<128x128xbf16, #tpu.memory_space<vmem>>, vector<128x128xbf16>
    %cst = arith.constant dense<0.000000e+00> : vector<16x128xf32>
    %6 = tpu.matmul %4, %5, %cst {dimension_numbers = #tpu.dot_dimension_numbers<[1], [0], [0], [1], [0, 0, 1, 1], [], []>} : vector<16x128xbf16>, vector<128x128xbf16>, vector<16x128xf32> -> vector<16x128xf32>
    %7 = arith.addf %3, %6 : vector<16x128xf32>
    %c0_6 = arith.constant 0 : index
    %c0_7 = arith.constant 0 : index
    %8 = vector.load %arg6[%c0_6, %c0_7] : memref<16x128xf32, #tpu.memory_space<vmem>>, vector<16x128xf32>
    tpu.vector_store %arg6[%c0_6, %c0_7], %7 {strides = array<i32>} : memref<16x128xf32, #tpu.memory_space<vmem>>, vector<16x128xf32>,
    %c0_i32_8 = arith.constant 0 : i32
    %9 = arith.cmpi eq, %arg1, %c0_i32_8 : i32
    %10 = arith.extui %9 : i1 to i32
    %c0_i32_9 = arith.constant 0 : i32
    %11 = arith.cmpi ne, %10, %c0_i32_9 : i32
    scf.if %11 {
      %c0_10 = arith.constant 0 : index
      %c0_11 = arith.constant 0 : index
      %12 = vector.load %arg6[%c0_10, %c0_11] : memref<16x128xf32, #tpu.memory_space<vmem>>, vector<16x128xf32>
      %c0_12 = arith.constant 0 : index
      %c0_13 = arith.constant 0 : index
      %13 = vector.load %arg4[%c0_12, %c0_13] : memref<1x128xf32, #tpu.memory_space<vmem>>, vector<1x128xf32>
      %14 = vector.broadcast %13 : vector<1x128xf32> to vector<16x128xf32>
      %15 = arith.addf %12, %14 : vector<16x128xf32>
      %c0_14 = arith.constant 0 : index
      %c0_15 = arith.constant 0 : index
      %16 = vector.load %arg5[%c0_14, %c0_15] : memref<16x128xf32, #tpu.memory_space<vmem>>, vector<16x128xf32>
      tpu.vector_store %arg5[%c0_14, %c0_15], %15 {strides = array<i32>} : memref<16x128xf32, #tpu.memory_space<vmem>>, vector<16x128xf32>,
    } else {
    }
    return
  }
  func.func @transform_0(%arg0: i32, %arg1: i32) -> (i32, i32) {
    %c0_i32 = arith.constant 0 : i32
    return %arg0, %arg1 : i32, i32
  }
  func.func @transform_1(%arg0: i32, %arg1: i32) -> (i32, i32) {
    %c0_i32 = arith.constant 0 : i32
    %c0_i32_0 = arith.constant 0 : i32
    return %arg1, %c0_i32 : i32, i32
  }
  func.func @transform_2(%arg0: i32, %arg1: i32) -> (i32, i32) {
    %c0_i32 = arith.constant 0 : i32
    %c0_i32_0 = arith.constant 0 : i32
    %c0_i32_1 = arith.constant 0 : i32
    return %c0_i32, %c0_i32_0 : i32, i32
  }
  func.func @transform_3(%arg0: i32, %arg1: i32) -> (i32, i32) {
    %c0_i32 = arith.constant 0 : i32
    %c0_i32_0 = arith.constant 0 : i32
    return %arg0, %c0_i32 : i32, i32
  }
}

</mosaic_0001>

<bundles_post_ra>
// kernel: simple_cnn_forward.6
= control target key start
LH: loop header
LB: loop body
LE: loop exit
PB: predicated region body
PF: predicated region fallthrough
CT: control target
= control target key end

     0   :  { %s2310_s12 = smov 0   ;;  %s2312_s13 = smov 0   ;;  %s2511_s0 = inlined_call_operand.vmem [shape: bf16[2048,128], index: 0, kind: input, shape index: {}]   ;;  %s2512_s1 = inlined_call_operand.vmem [shape: bf16[128,128], index: 1, kind: input, shape index: {}]   ;;  %s2513_s2 = inlined_call_operand.vmem [shape: f32[1,128], index: 2, kind: input, shape index: {}]   ;;  %s2514_s3 = inlined_call_operand.vmem [shape: bf16[2048,128], index: 3, kind: output, shape index: {}]  }
   0x1   :  { %s2314_s14 = smov 0  }
   0x2 LB: > { %s25_s15 = sadd.s32 1, %s2284_s13  ;;  %p1699_p0 = scmp.ge.s32.totalorder %s2288_s14, 1  ;;  %s2288_s14 = sphi %s2314_s14, %s13_s14   ;;  %s2284_s13 = sphi %s2312_s13, %s2516_s13   ;;  %s2280_s12 = sphi %s2310_s12, %s2515_s12  }
   0x3   : > { %p27_p1 = scmp.ge.s32.totalorder %s25_s15, 4  ;;  %p166_p2 = scmp.lt.s32.totalorder %s2288_s14, 5 }
   0x5   : > { %s2518_s15 = smov (%p27_p1, %s25_s15), 0  ;;  %p167_p3 = pnand %p1699_p0, %p166_p2 }
   0x6   : > { %v2226_v0 = vld [vmem:[%s2512_s1] sm:$0xff] (!%p167_p3)   ;;  %s1700_s18 = sshll.u32 (!%p167_p3), %s2280_s12, 6  ;;  %v2227_v1 = vld [vmem:[%s2512_s1 + $0x8] sm:$0xff] (!%p167_p3)   ;;  %v2228_v2 = vld [vmem:[%s2512_s1 + $0x10] sm:$0xff] (!%p167_p3)  }
   0x7   : > { %170 = sbr.rel (%p167_p3) target bundleno = 317 (0x13d), region = 32  ;;  %p199_p4 = scmp.lt.s32.totalorder (!%p167_p3), %s1700_s18, 255  ;;  %2106 = vmatprep.subr.bf16.mxu0 (!%p167_p3), %v2226_v0  ;;  %2186 = vmatprep.subr.bf16.mxu1 (!%p167_p3), %v2226_v0  ;;  %v2229_v3 = vld [vmem:[%s2512_s1 + $0x18] sm:$0xff] (!%p167_p3)   ;;  %v2230_v6 = vld [vmem:[%s2512_s1 + $0x20] sm:$0xff] (!%p167_p3)   ;;  %v2231_v7 = vld [vmem:[%s2512_s1 + $0x28] sm:$0xff] (!%p167_p3)  }
   0x8   : > { %2107 = vmatpush3.bf16.msra.mxu0 (!%p167_p3), %v2226_v0  ;;  %2194 = vmatpush3.bf16.msra.mxu1 (!%p167_p3), %v2226_v0  ;;  %v2232_v8 = vld [vmem:[%s2512_s1 + $0x30] sm:$0xff] (!%p167_p3)   ;;  %v2233_v9 = vld [vmem:[%s2512_s1 + $0x38] sm:$0xff] (!%p167_p3)   ;;  %v2397_v40 = vld [vmem:[%s2513_s2] ss:$0 sm:$0xff] (!%p167_p3) }
   0x9   : > { %2108 = vmatprep.subr.bf16.mxu0 (!%p167_p3), %v2227_v1  ;;  %2187 = vmatprep.subr.bf16.mxu1 (!%p167_p3), %v2227_v1 }
   0xc   : > { %2109 = vmatpush3.bf16.msra.mxu0 (!%p167_p3), %v2227_v1  ;;  %2195 = vmatpush3.bf16.msra.mxu1 (!%p167_p3), %v2227_v1 }
   0xd   : > { %2110 = vmatprep.subr.bf16.mxu0 (!%p167_p3), %v2228_v2  ;;  %2188 = vmatprep.subr.bf16.mxu1 (!%p167_p3), %v2228_v2 }
   0xe   : > { %s2520_s18 = smov (!%p199_p4, %s1700_s18), 255 }
   0xf   : > { %s1701_s23 = sshll.u32 %s2520_s18, 2 }
  0x10   : > { %s2345_s26 = scalar_lea.vmem %s2511_s0, %s1701_s23  ;;  %2111 = vmatpush3.bf16.msra.mxu0 %v2228_v2  ;;  %2196 = vmatpush3.bf16.msra.mxu1 %v2228_v2  ;;  %s2412_s17 = scalar_lea.vmem %s2514_s3, %s1701_s23 }
  0x11   : > { %v2234_v4 = vld [vmem:[%s2345_s26] sm:$0xff]   ;;  %2112 = vmatprep.subr.bf16.mxu0 %v2229_v3  ;;  %2189 = vmatprep.subr.bf16.mxu1 %v2229_v3  ;;  %v2236_v10 = vld [vmem:[%s2345_s26 + $0x8] sm:$0xff]   ;;  %v2238_v12 = vld [vmem:[%s2345_s26 + $0x10] sm:$0xff]  }
  0x12   : > { %v2235_v5 = vld [vmem:[%s2345_s26 + $0x80] sm:$0xff]   ;;  %2122 = vmatprep.mubr.bf16.mxu0 %v2234_v4  ;;  %v2237_v11 = vld [vmem:[%s2345_s26 + $0x88] sm:$0xff]   ;;  %v2239_v13 = vld [vmem:[%s2345_s26 + $0x90] sm:$0xff]  }
  0x13   : > { %2154 = vmatprep.mubr.bf16.mxu1 %v2235_v5  ;;  %v2240_v14 = vld [vmem:[%s2345_s26 + $0x18] sm:$0xff]   ;;  %v2242_v16 = vld [vmem:[%s2345_s26 + $0x20] sm:$0xff]   ;;  %v2244_v18 = vld [vmem:[%s2345_s26 + $0x28] sm:$0xff]  }
  0x14   : > { %2113 = vmatpush3.bf16.msra.mxu0 %v2229_v3  ;;  %2197 = vmatpush3.bf16.msra.mxu1 %v2229_v3  ;;  %v2241_v15 = vld [vmem:[%s2345_s26 + $0x98] sm:$0xff]   ;;  %v2243_v17 = vld [vmem:[%s2345_s26 + $0xa0] sm:$0xff]   ;;  %v2245_v19 = vld [vmem:[%s2345_s26 + $0xa8] sm:$0xff]  }
  0x15   : > { %2114 = vmatprep.subr.bf16.mxu0 %v2230_v6  ;;  %2190 = vmatprep.subr.bf16.mxu1 %v2230_v6  ;;  %v2246_v20 = vld [vmem:[%s2345_s26 + $0x30] sm:$0xff]   ;;  %v2248_v22 = vld [vmem:[%s2345_s26 + $0x38] sm:$0xff]   ;;  %v2250_v24 = vld [vmem:[%s2345_s26 + $0x40] sm:$0xff]  }
  0x16   : > { %v2247_v21 = vld [vmem:[%s2345_s26 + $0xb0] sm:$0xff]   ;;  %v2249_v23 = vld [vmem:[%s2345_s26 + $0xb8] sm:$0xff]   ;;  %v2251_v25 = vld [vmem:[%s2345_s26 + $0xc0] sm:$0xff]  }
  0x17   : > { %v2252_v26 = vld [vmem:[%s2345_s26 + $0x48] sm:$0xff]   ;;  %v2254_v28 = vld [vmem:[%s2345_s26 + $0x50] sm:$0xff]   ;;  %v2256_v30 = vld [vmem:[%s2345_s26 + $0x58] sm:$0xff]  }
  0x18   : > { %2115 = vmatpush3.bf16.msra.mxu0 %v2230_v6  ;;  %2198 = vmatpush3.bf16.msra.mxu1 %v2230_v6  ;;  %v2253_v27 = vld [vmem:[%s2345_s26 + $0xc8] sm:$0xff]   ;;  %v2255_v29 = vld [vmem:[%s2345_s26 + $0xd0] sm:$0xff]   ;;  %v2257_v31 = vld [vmem:[%s2345_s26 + $0xd8] sm:$0xff]  }
  0x19   : > { %2116 = vmatprep.subr.bf16.mxu0 %v2231_v7  ;;  %2191 = vmatprep.subr.bf16.mxu1 %v2231_v7  ;;  %v2258_v32 = vld [vmem:[%s2345_s26 + $0x60] sm:$0xff]   ;;  %v2260_v34 = vld [vmem:[%s2345_s26 + $0x68] sm:$0xff]   ;;  %v2262_v36 = vld [vmem:[%s2345_s26 + $0x70] sm:$0xff]  }
  0x1a   : > { %v2259_v33 = vld [vmem:[%s2345_s26 + $0xe0] sm:$0xff]   ;;  %v2261_v35 = vld [vmem:[%s2345_s26 + $0xe8] sm:$0xff]   ;;  %v2263_v37 = vld [vmem:[%s2345_s26 + $0xf0] sm:$0xff]  }
  0x1b   : > { %v2264_v38 = vld [vmem:[%s2345_s26 + $0x78] sm:$0xff]  }
  0x1c   : > { %2117 = vmatpush3.bf16.msra.mxu0 %v2231_v7  ;;  %2199 = vmatpush3.bf16.msra.mxu1 %v2231_v7  ;;  %v2265_v39 = vld [vmem:[%s2345_s26 + $0xf8] sm:$0xff]  }
  0x1d   : > { %2118 = vmatprep.subr.bf16.mxu0 %v2232_v8  ;;  %2192 = vmatprep.subr.bf16.mxu1 %v2232_v8 }
  0x20   : > { %2119 = vmatpush3.bf16.msra.mxu0 %v2232_v8  ;;  %2200 = vmatpush3.bf16.msra.mxu1 %v2232_v8 }
  0x21   : > { %2120 = vmatprep.subr.bf16.mxu0 %v2233_v9  ;;  %2193 = vmatprep.subr.bf16.mxu1 %v2233_v9 }
  0x24   : > { %2121 = vmatpush3.bf16.msra.mxu0 %v2233_v9  ;;  %2201 = vmatpush3.bf16.msra.mxu1 %v2233_v9 }
  0x27   : > { %2123 = vmatmul.mubr.bf16.vlgmr.msra.gmra.mrb[0].mxu0 %v2236_v10  ;;  %2155 = vmatmul.mubr.bf16.vlgmr.msra.gmra.mrb[0].mxu1 %v2237_v11 }
  0x28   : > { %2126 = vmatprep.mubr.bf16.mxu0 %v2238_v12  ;;  %2158 = vmatprep.mubr.bf16.mxu1 %v2239_v13 }
  0x2f   : > { %2127 = vmatmul.mubr.bf16.gmra.mrb[4].mxu0 %v2240_v14  ;;  %2159 = vmatmul.mubr.bf16.gmra.mrb[4].mxu1 %v2241_v15 }
  0x30   : > { %2130 = vmatprep.mubr.bf16.mxu0 %v2242_v16  ;;  %2162 = vmatprep.mubr.bf16.mxu1 %v2243_v17 }
  0x37   : > { %2131 = vmatmul.mubr.bf16.gmra.mrb[8].mxu0 %v2244_v18  ;;  %2163 = vmatmul.mubr.bf16.gmra.mrb[8].mxu1 %v2245_v19 }
  0x38   : > { %2134 = vmatprep.mubr.bf16.mxu0 %v2246_v20  ;;  %2166 = vmatprep.mubr.bf16.mxu1 %v2247_v21 }
  0x3f   : > { %2135 = vmatmul.mubr.bf16.gmra.mrb[12].mxu0 %v2248_v22  ;;  %2167 = vmatmul.mubr.bf16.gmra.mrb[12].mxu1 %v2249_v23 }
  0x40   : > { %2138 = vmatprep.mubr.bf16.mxu0 %v2250_v24  ;;  %2170 = vmatprep.mubr.bf16.mxu1 %v2251_v25 }
  0x47   : > { %2139 = vmatmul.mubr.bf16.gmra.mrb[16].mxu0 %v2252_v26  ;;  %2171 = vmatmul.mubr.bf16.gmra.mrb[16].mxu1 %v2253_v27 }
  0x48   : > { %2142 = vmatprep.mubr.bf16.mxu0 %v2254_v28  ;;  %2174 = vmatprep.mubr.bf16.mxu1 %v2255_v29 }
  0x4f   : > { %2143 = vmatmul.mubr.bf16.gmra.mrb[20].mxu0 %v2256_v30  ;;  %2175 = vmatmul.mubr.bf16.gmra.mrb[20].mxu1 %v2257_v31 }
  0x50   : > { %2146 = vmatprep.mubr.bf16.mxu0 %v2258_v32  ;;  %2178 = vmatprep.mubr.bf16.mxu1 %v2259_v33 }
  0x57   : > { %2147 = vmatmul.mubr.bf16.gmra.mrb[24].mxu0 %v2260_v34  ;;  %2179 = vmatmul.mubr.bf16.gmra.mrb[24].mxu1 %v2261_v35 }
  0x58   : > { %2150 = vmatprep.mubr.bf16.mxu0 %v2262_v36  ;;  %2182 = vmatprep.mubr.bf16.mxu1 %v2263_v37 }
  0x5f   : > { %2151 = vmatmul.mubr.bf16.gmra.mrb[28].mxu0 %v2264_v38  ;;  %2183 = vmatmul.mubr.bf16.gmra.mrb[28].mxu1 %v2265_v39 }
  0xfa   : > { %v2124_v41 = vpop.f32.mrb[0].mxu0  ;;  %v2156_v42 = vpop.f32.mrb[0].mxu1 }
  0xfb   : > { %v1165_v43 = vadd.f32 %v2124_v41, %v2397_v40  ;;  %v1197_v44 = vadd.f32 %v2156_v42, %v2397_v40  ;;  %v706_v45 = vpop.f32.mrb[1].mxu0  ;;  %v834_v46 = vpop.f32.mrb[1].mxu1 }
  0xfc   : > { %v1163_v47 = vadd.f32 %v2397_v40, %v706_v45  ;;  %v1195_v48 = vadd.f32 %v2397_v40, %v834_v46  ;;  %v2125_v49 = vpop.f32.mrb[2].mxu0  ;;  %v2157_v50 = vpop.f32.mrb[2].mxu1 }
  0xfd   : > { %v1166_v51 = vadd.f32 %v2125_v49, %v2397_v40  ;;  %v1198_v52 = vadd.f32 %v2157_v50, %v2397_v40  ;;  %v709_v53 = vpop.f32.mrb[3].mxu0  ;;  %v837_v54 = vpop.f32.mrb[3].mxu1  ;;  %v1229_v57 = vmax.f32 %v1165_v43, 0.0  ;;  %v1261_v58 = vmax.f32 %v1197_v44, 0.0 }
  0xfe   : > { %v1164_v55 = vadd.f32 %v2397_v40, %v709_v53  ;;  %v1196_v56 = vadd.f32 %v2397_v40, %v837_v54  ;;  %v1227_v61 = vmax.f32 %v1163_v47, 0.0  ;;  %v1259_v62 = vmax.f32 %v1195_v48, 0.0 }
  0xff   : > { %v1230_v59 = vmax.f32 %v1166_v51, 0.0  ;;  %v1262_v60 = vmax.f32 %v1198_v52, 0.0 }
 0x100   : > { %v1228_v63 = vmax.f32 %v1164_v55, 0.0  ;;  %v1260_v0 = vmax.f32 %v1196_v56, 0.0 }
 0x101   : > { %v1883_v1 = vpack.c.bf16 %v1230_v59, %v1229_v57  ;;  %v1963_v2 = vpack.c.bf16 %v1262_v60, %v1261_v58 }
 0x102   : > { %v1878_v3 = vpack.c.bf16 %v1228_v63, %v1227_v61  ;;  %v1958_v4 = vpack.c.bf16 %v1260_v0, %v1259_v62  ;;  %v2128_v5 = vpop.f32.mrb[4].mxu0  ;;  %v2160_v6 = vpop.f32.mrb[4].mxu1 }
 0x103   : > { %2035 = vst [vmem:[%s2412_s17 + $0x8] sm:$0xff] %v1883_v1   ;;  %2051 = vst [vmem:[%s2412_s17 + $0x88] sm:$0xff] %v1963_v2   ;;  %v1169_v7 = vadd.f32 %v2128_v5, %v2397_v40  ;;  %v1201_v8 = vadd.f32 %v2160_v6, %v2397_v40  ;;  %v722_v9 = vpop.f32.mrb[5].mxu0  ;;  %v850_v10 = vpop.f32.mrb[5].mxu1 }
 0x104   : > { %1879 = vst [vmem:[%s2412_s17] sm:$0xff] %v1878_v3   ;;  %2050 = vst [vmem:[%s2412_s17 + $0x80] sm:$0xff] %v1958_v4   ;;  %v1167_v11 = vadd.f32 %v2397_v40, %v722_v9  ;;  %v1199_v12 = vadd.f32 %v2397_v40, %v850_v10  ;;  %v2129_v13 = vpop.f32.mrb[6].mxu0  ;;  %v2161_v14 = vpop.f32.mrb[6].mxu1 }
 0x105   : > { %v1170_v15 = vadd.f32 %v2129_v13, %v2397_v40  ;;  %v1202_v16 = vadd.f32 %v2161_v14, %v2397_v40  ;;  %v725_v17 = vpop.f32.mrb[7].mxu0  ;;  %v853_v18 = vpop.f32.mrb[7].mxu1  ;;  %v1233_v21 = vmax.f32 %v1169_v7, 0.0  ;;  %v1265_v22 = vmax.f32 %v1201_v8, 0.0 }
 0x106   : > { %v1168_v19 = vadd.f32 %v2397_v40, %v725_v17  ;;  %v1200_v20 = vadd.f32 %v2397_v40, %v853_v18  ;;  %v1231_v25 = vmax.f32 %v1167_v11, 0.0  ;;  %v1263_v26 = vmax.f32 %v1199_v12, 0.0 }
 0x107   : > { %v1234_v23 = vmax.f32 %v1170_v15, 0.0  ;;  %v1266_v24 = vmax.f32 %v1202_v16, 0.0 }
 0x108   : > { %v1232_v27 = vmax.f32 %v1168_v19, 0.0  ;;  %v1264_v28 = vmax.f32 %v1200_v20, 0.0 }
 0x109   : > { %v1893_v29 = vpack.c.bf16 %v1234_v23, %v1233_v21  ;;  %v1973_v30 = vpack.c.bf16 %v1266_v24, %v1265_v22 }
 0x10a   : > { %v1888_v31 = vpack.c.bf16 %v1232_v27, %v1231_v25  ;;  %v1968_v32 = vpack.c.bf16 %v1264_v28, %v1263_v26  ;;  %v2132_v33 = vpop.f32.mrb[8].mxu0  ;;  %v2164_v34 = vpop.f32.mrb[8].mxu1 }
 0x10b   : > { %2037 = vst [vmem:[%s2412_s17 + $0x18] sm:$0xff] %v1893_v29   ;;  %2053 = vst [vmem:[%s2412_s17 + $0x98] sm:$0xff] %v1973_v30   ;;  %v1173_v35 = vadd.f32 %v2132_v33, %v2397_v40  ;;  %v1205_v36 = vadd.f32 %v2164_v34, %v2397_v40  ;;  %v738_v37 = vpop.f32.mrb[9].mxu0  ;;  %v866_v38 = vpop.f32.mrb[9].mxu1 }
 0x10c   : > { %2036 = vst [vmem:[%s2412_s17 + $0x10] sm:$0xff] %v1888_v31   ;;  %2052 = vst [vmem:[%s2412_s17 + $0x90] sm:$0xff] %v1968_v32   ;;  %v1171_v39 = vadd.f32 %v2397_v40, %v738_v37  ;;  %v1203_v41 = vadd.f32 %v2397_v40, %v866_v38  ;;  %v2133_v42 = vpop.f32.mrb[10].mxu0  ;;  %v2165_v43 = vpop.f32.mrb[10].mxu1 }
 0x10d   : > { %v1174_v44 = vadd.f32 %v2133_v42, %v2397_v40  ;;  %v1206_v45 = vadd.f32 %v2165_v43, %v2397_v40  ;;  %v741_v46 = vpop.f32.mrb[11].mxu0  ;;  %v869_v47 = vpop.f32.mrb[11].mxu1  ;;  %v1237_v50 = vmax.f32 %v1173_v35, 0.0  ;;  %v1269_v51 = vmax.f32 %v1205_v36, 0.0 }
 0x10e   : > { %v1172_v48 = vadd.f32 %v2397_v40, %v741_v46  ;;  %v1204_v49 = vadd.f32 %v2397_v40, %v869_v47  ;;  %v1235_v54 = vmax.f32 %v1171_v39, 0.0  ;;  %v1267_v55 = vmax.f32 %v1203_v41, 0.0 }
 0x10f   : > { %v1238_v52 = vmax.f32 %v1174_v44, 0.0  ;;  %v1270_v53 = vmax.f32 %v1206_v45, 0.0 }
 0x110   : > { %v1236_v56 = vmax.f32 %v1172_v48, 0.0  ;;  %v1268_v57 = vmax.f32 %v1204_v49, 0.0 }
 0x111   : > { %v1903_v58 = vpack.c.bf16 %v1238_v52, %v1237_v50  ;;  %v1983_v59 = vpack.c.bf16 %v1270_v53, %v1269_v51 }
 0x112   : > { %v1898_v60 = vpack.c.bf16 %v1236_v56, %v1235_v54  ;;  %v1978_v61 = vpack.c.bf16 %v1268_v57, %v1267_v55  ;;  %v2136_v62 = vpop.f32.mrb[12].mxu0  ;;  %v2168_v63 = vpop.f32.mrb[12].mxu1 }
 0x113   : > { %2039 = vst [vmem:[%s2412_s17 + $0x28] sm:$0xff] %v1903_v58   ;;  %2055 = vst [vmem:[%s2412_s17 + $0xa8] sm:$0xff] %v1983_v59   ;;  %v1177_v0 = vadd.f32 %v2136_v62, %v2397_v40  ;;  %v1209_v1 = vadd.f32 %v2168_v63, %v2397_v40  ;;  %v754_v2 = vpop.f32.mrb[13].mxu0  ;;  %v882_v3 = vpop.f32.mrb[13].mxu1 }
 0x114   : > { %2038 = vst [vmem:[%s2412_s17 + $0x20] sm:$0xff] %v1898_v60   ;;  %2054 = vst [vmem:[%s2412_s17 + $0xa0] sm:$0xff] %v1978_v61   ;;  %v1175_v4 = vadd.f32 %v2397_v40, %v754_v2  ;;  %v1207_v5 = vadd.f32 %v2397_v40, %v882_v3  ;;  %v2137_v6 = vpop.f32.mrb[14].mxu0  ;;  %v2169_v7 = vpop.f32.mrb[14].mxu1 }
 0x115   : > { %v1178_v8 = vadd.f32 %v2137_v6, %v2397_v40  ;;  %v1210_v9 = vadd.f32 %v2169_v7, %v2397_v40  ;;  %v757_v10 = vpop.f32.mrb[15].mxu0  ;;  %v885_v11 = vpop.f32.mrb[15].mxu1  ;;  %v1241_v14 = vmax.f32 %v1177_v0, 0.0  ;;  %v1273_v15 = vmax.f32 %v1209_v1, 0.0 }
 0x116   : > { %v1176_v12 = vadd.f32 %v2397_v40, %v757_v10  ;;  %v1208_v13 = vadd.f32 %v2397_v40, %v885_v11  ;;  %v1239_v18 = vmax.f32 %v1175_v4, 0.0  ;;  %v1271_v19 = vmax.f32 %v1207_v5, 0.0 }
 0x117   : > { %v1242_v16 = vmax.f32 %v1178_v8, 0.0  ;;  %v1274_v17 = vmax.f32 %v1210_v9, 0.0 }
 0x118   : > { %v1240_v20 = vmax.f32 %v1176_v12, 0.0  ;;  %v1272_v21 = vmax.f32 %v1208_v13, 0.0 }
 0x119   : > { %v1913_v22 = vpack.c.bf16 %v1242_v16, %v1241_v14  ;;  %v1993_v23 = vpack.c.bf16 %v1274_v17, %v1273_v15 }
 0x11a   : > { %v1908_v24 = vpack.c.bf16 %v1240_v20, %v1239_v18  ;;  %v1988_v25 = vpack.c.bf16 %v1272_v21, %v1271_v19  ;;  %v2140_v26 = vpop.f32.mrb[16].mxu0  ;;  %v2172_v27 = vpop.f32.mrb[16].mxu1 }
 0x11b   : > { %2041 = vst [vmem:[%s2412_s17 + $0x38] sm:$0xff] %v1913_v22   ;;  %2057 = vst [vmem:[%s2412_s17 + $0xb8] sm:$0xff] %v1993_v23   ;;  %v1181_v28 = vadd.f32 %v2140_v26, %v2397_v40  ;;  %v1213_v29 = vadd.f32 %v2172_v27, %v2397_v40  ;;  %v770_v30 = vpop.f32.mrb[17].mxu0  ;;  %v898_v31 = vpop.f32.mrb[17].mxu1 }
 0x11c   : > { %2040 = vst [vmem:[%s2412_s17 + $0x30] sm:$0xff] %v1908_v24   ;;  %2056 = vst [vmem:[%s2412_s17 + $0xb0] sm:$0xff] %v1988_v25   ;;  %v1179_v32 = vadd.f32 %v2397_v40, %v770_v30  ;;  %v1211_v33 = vadd.f32 %v2397_v40, %v898_v31  ;;  %v2141_v34 = vpop.f32.mrb[18].mxu0  ;;  %v2173_v35 = vpop.f32.mrb[18].mxu1 }
 0x11d   : > { %v1182_v36 = vadd.f32 %v2141_v34, %v2397_v40  ;;  %v1214_v37 = vadd.f32 %v2173_v35, %v2397_v40  ;;  %v773_v38 = vpop.f32.mrb[19].mxu0  ;;  %v901_v39 = vpop.f32.mrb[19].mxu1  ;;  %v1245_v43 = vmax.f32 %v1181_v28, 0.0  ;;  %v1277_v44 = vmax.f32 %v1213_v29, 0.0 }
 0x11e   : > { %v1180_v41 = vadd.f32 %v2397_v40, %v773_v38  ;;  %v1212_v42 = vadd.f32 %v2397_v40, %v901_v39  ;;  %v1243_v47 = vmax.f32 %v1179_v32, 0.0  ;;  %v1275_v48 = vmax.f32 %v1211_v33, 0.0 }
 0x11f   : > { %v1246_v45 = vmax.f32 %v1182_v36, 0.0  ;;  %v1278_v46 = vmax.f32 %v1214_v37, 0.0 }
 0x120   : > { %v1244_v49 = vmax.f32 %v1180_v41, 0.0  ;;  %v1276_v50 = vmax.f32 %v1212_v42, 0.0 }
 0x121   : > { %v1923_v51 = vpack.c.bf16 %v1246_v45, %v1245_v43  ;;  %v2003_v52 = vpack.c.bf16 %v1278_v46, %v1277_v44 }
 0x122   : > { %v1918_v53 = vpack.c.bf16 %v1244_v49, %v1243_v47  ;;  %v1998_v54 = vpack.c.bf16 %v1276_v50, %v1275_v48  ;;  %v2144_v55 = vpop.f32.mrb[20].mxu0  ;;  %v2176_v56 = vpop.f32.mrb[20].mxu1 }
 0x123   : > { %2043 = vst [vmem:[%s2412_s17 + $0x48] sm:$0xff] %v1923_v51   ;;  %2059 = vst [vmem:[%s2412_s17 + $0xc8] sm:$0xff] %v2003_v52   ;;  %v1185_v57 = vadd.f32 %v2144_v55, %v2397_v40  ;;  %v1217_v58 = vadd.f32 %v2176_v56, %v2397_v40  ;;  %v786_v59 = vpop.f32.mrb[21].mxu0  ;;  %v914_v60 = vpop.f32.mrb[21].mxu1 }
 0x124   : > { %2042 = vst [vmem:[%s2412_s17 + $0x40] sm:$0xff] %v1918_v53   ;;  %2058 = vst [vmem:[%s2412_s17 + $0xc0] sm:$0xff] %v1998_v54   ;;  %v1183_v61 = vadd.f32 %v2397_v40, %v786_v59  ;;  %v1215_v62 = vadd.f32 %v2397_v40, %v914_v60  ;;  %v2145_v63 = vpop.f32.mrb[22].mxu0  ;;  %v2177_v0 = vpop.f32.mrb[22].mxu1 }
 0x125   : > { %v1186_v1 = vadd.f32 %v2145_v63, %v2397_v40  ;;  %v1218_v2 = vadd.f32 %v2177_v0, %v2397_v40  ;;  %v789_v3 = vpop.f32.mrb[23].mxu0  ;;  %v917_v4 = vpop.f32.mrb[23].mxu1  ;;  %v1249_v7 = vmax.f32 %v1185_v57, 0.0  ;;  %v1281_v8 = vmax.f32 %v1217_v58, 0.0 }
 0x126   : > { %v1184_v5 = vadd.f32 %v2397_v40, %v789_v3  ;;  %v1216_v6 = vadd.f32 %v2397_v40, %v917_v4  ;;  %v1247_v11 = vmax.f32 %v1183_v61, 0.0  ;;  %v1279_v12 = vmax.f32 %v1215_v62, 0.0 }
 0x127   : > { %v1250_v9 = vmax.f32 %v1186_v1, 0.0  ;;  %v1282_v10 = vmax.f32 %v1218_v2, 0.0 }
 0x128   : > { %v1248_v13 = vmax.f32 %v1184_v5, 0.0  ;;  %v1280_v14 = vmax.f32 %v1216_v6, 0.0 }
 0x129   : > { %v1933_v15 = vpack.c.bf16 %v1250_v9, %v1249_v7  ;;  %v2013_v16 = vpack.c.bf16 %v1282_v10, %v1281_v8 }
 0x12a   : > { %v1928_v17 = vpack.c.bf16 %v1248_v13, %v1247_v11  ;;  %v2008_v18 = vpack.c.bf16 %v1280_v14, %v1279_v12  ;;  %v2148_v19 = vpop.f32.mrb[24].mxu0  ;;  %v2180_v20 = vpop.f32.mrb[24].mxu1 }
 0x12b   : > { %2045 = vst [vmem:[%s2412_s17 + $0x58] sm:$0xff] %v1933_v15   ;;  %2061 = vst [vmem:[%s2412_s17 + $0xd8] sm:$0xff] %v2013_v16   ;;  %v1189_v21 = vadd.f32 %v2148_v19, %v2397_v40  ;;  %v1221_v22 = vadd.f32 %v2180_v20, %v2397_v40  ;;  %v802_v23 = vpop.f32.mrb[25].mxu0  ;;  %v930_v24 = vpop.f32.mrb[25].mxu1 }
 0x12c   : > { %2044 = vst [vmem:[%s2412_s17 + $0x50] sm:$0xff] %v1928_v17   ;;  %2060 = vst [vmem:[%s2412_s17 + $0xd0] sm:$0xff] %v2008_v18   ;;  %v1187_v25 = vadd.f32 %v2397_v40, %v802_v23  ;;  %v1219_v26 = vadd.f32 %v2397_v40, %v930_v24  ;;  %v2149_v27 = vpop.f32.mrb[26].mxu0  ;;  %v2181_v28 = vpop.f32.mrb[26].mxu1 }
 0x12d   : > { %v1190_v29 = vadd.f32 %v2149_v27, %v2397_v40  ;;  %v1222_v30 = vadd.f32 %v2181_v28, %v2397_v40  ;;  %v805_v31 = vpop.f32.mrb[27].mxu0  ;;  %v933_v32 = vpop.f32.mrb[27].mxu1  ;;  %v1253_v35 = vmax.f32 %v1189_v21, 0.0  ;;  %v1285_v36 = vmax.f32 %v1221_v22, 0.0 }
 0x12e   : > { %v1188_v33 = vadd.f32 %v2397_v40, %v805_v31  ;;  %v1220_v34 = vadd.f32 %v2397_v40, %v933_v32  ;;  %v1251_v39 = vmax.f32 %v1187_v25, 0.0  ;;  %v1283_v41 = vmax.f32 %v1219_v26, 0.0 }
 0x12f   : > { %v1254_v37 = vmax.f32 %v1190_v29, 0.0  ;;  %v1286_v38 = vmax.f32 %v1222_v30, 0.0 }
 0x130   : > { %v1252_v42 = vmax.f32 %v1188_v33, 0.0  ;;  %v1284_v43 = vmax.f32 %v1220_v34, 0.0 }
 0x131   : > { %v1943_v44 = vpack.c.bf16 %v1254_v37, %v1253_v35  ;;  %v2023_v45 = vpack.c.bf16 %v1286_v38, %v1285_v36 }
 0x132   : > { %v1938_v46 = vpack.c.bf16 %v1252_v42, %v1251_v39  ;;  %v2018_v47 = vpack.c.bf16 %v1284_v43, %v1283_v41  ;;  %v2152_v48 = vpop.f32.mrb[28].mxu0  ;;  %v2184_v49 = vpop.f32.mrb[28].mxu1 }
 0x133   : > { %2047 = vst [vmem:[%s2412_s17 + $0x68] sm:$0xff] %v1943_v44   ;;  %2063 = vst [vmem:[%s2412_s17 + $0xe8] sm:$0xff] %v2023_v45   ;;  %v1193_v50 = vadd.f32 %v2152_v48, %v2397_v40  ;;  %v1225_v51 = vadd.f32 %v2184_v49, %v2397_v40  ;;  %v818_v52 = vpop.f32.mrb[29].mxu0  ;;  %v946_v53 = vpop.f32.mrb[29].mxu1 }
 0x134   : > { %2046 = vst [vmem:[%s2412_s17 + $0x60] sm:$0xff] %v1938_v46   ;;  %2062 = vst [vmem:[%s2412_s17 + $0xe0] sm:$0xff] %v2018_v47   ;;  %v1191_v54 = vadd.f32 %v2397_v40, %v818_v52  ;;  %v1223_v55 = vadd.f32 %v2397_v40, %v946_v53  ;;  %v2153_v56 = vpop.f32.mrb[30].mxu0  ;;  %v2185_v57 = vpop.f32.mrb[30].mxu1 }
 0x135   : > { %v1194_v58 = vadd.f32 %v2153_v56, %v2397_v40  ;;  %v1226_v59 = vadd.f32 %v2185_v57, %v2397_v40  ;;  %v821_v60 = vpop.f32.mrb[31].mxu0  ;;  %v949_v61 = vpop.f32.mrb[31].mxu1  ;;  %v1257_v0 = vmax.f32 %v1193_v50, 0.0  ;;  %v1289_v1 = vmax.f32 %v1225_v51, 0.0 }
 0x136   : > { %v1192_v62 = vadd.f32 %v2397_v40, %v821_v60  ;;  %v1224_v63 = vadd.f32 %v2397_v40, %v949_v61  ;;  %v1255_v4 = vmax.f32 %v1191_v54, 0.0  ;;  %v1287_v5 = vmax.f32 %v1223_v55, 0.0 }
 0x137   : > { %v1258_v2 = vmax.f32 %v1194_v58, 0.0  ;;  %v1290_v3 = vmax.f32 %v1226_v59, 0.0 }
 0x138   : > { %v1256_v6 = vmax.f32 %v1192_v62, 0.0  ;;  %v1288_v7 = vmax.f32 %v1224_v63, 0.0 }
 0x139   : > { %v1953_v8 = vpack.c.bf16 %v1258_v2, %v1257_v0  ;;  %v2033_v9 = vpack.c.bf16 %v1290_v3, %v1289_v1 }
 0x13a   : > { %v1948_v10 = vpack.c.bf16 %v1256_v6, %v1255_v4  ;;  %v2028_v11 = vpack.c.bf16 %v1288_v7, %v1287_v5 }
 0x13b   : > { %2049 = vst [vmem:[%s2412_s17 + $0x78] sm:$0xff] %v1953_v8   ;;  %2065 = vst [vmem:[%s2412_s17 + $0xf8] sm:$0xff] %v2033_v9  }
 0x13c   : > { %2048 = vst [vmem:[%s2412_s17 + $0x70] sm:$0xff] %v1948_v10   ;;  %2064 = vst [vmem:[%s2412_s17 + $0xf0] sm:$0xff] %v2028_v11  }
 0x13d PF: > { %s13_s14 = sadd.s32 1, %s2288_s14   ;;  %s2515_s12 = smov %s2284_s13 }
 0x13e   : > { %p10_p5 = scmp.ge.s32.totalorder %s13_s14, 6   ;;  %s2516_s13 = smov %s2518_s15 }
 0x140   :  { %12 = sbr.rel (!%p10_p5) target bundleno = 2 (0x2), region = 73 }

// kernel: simple_cnn_forward.8
= control target key start
LH: loop header
LB: loop body
LE: loop exit
PB: predicated region body
PF: predicated region fallthrough
CT: control target
= control target key end

     0   :  { %v1734_v0 = vmov 0   ;;  %s2115_s1 = inlined_call_operand.vmem [shape: bf16[256,128], index: 1, kind: input, shape index: {}]   ;;  %s2116_s0 = inlined_call_operand.vmem [shape: bf16[400,256], index: 0, kind: input, shape index: {}]   ;;  %s2117_s2 = inlined_call_operand.vmem [shape: f32[1,128], index: 2, kind: input, shape index: {}]   ;;  %s2118_s3 = inlined_call_operand.vmem [shape: bf16[400,128], index: 3, kind: output, shape index: {}]  }
   0x1   :  { %547 = vmatprep.subr.bf16.mxu0 %v1734_v0  ;;  %v1643_v1 = vld [vmem:[%s2115_s1] sm:$0xff]   ;;  %1610 = vmatprep.subr.bf16.mxu1 %v1734_v0  ;;  %v1644_v2 = vld [vmem:[%s2115_s1 + $0x8] sm:$0xff]   ;;  %v1645_v3 = vld [vmem:[%s2115_s1 + $0x10] sm:$0xff]  }
   0x2   :  { %548 = vmatpush1.bf16.msra.mxu0 %v1643_v1  ;;  %1626 = vmatpush1.bf16.msra.mxu1 %v1643_v1  ;;  %v1646_v4 = vld [vmem:[%s2115_s1 + $0x18] sm:$0xff]   ;;  %v1647_v5 = vld [vmem:[%s2115_s1 + $0x20] sm:$0xff]   ;;  %v1648_v7 = vld [vmem:[%s2115_s1 + $0x28] sm:$0xff]  }
   0x3   :  { %549 = vmatprep.subr.bf16.mxu0 %v1734_v0  ;;  %1611 = vmatprep.subr.bf16.mxu1 %v1734_v0  ;;  %v1661_v6 = vld [vmem:[%s2116_s0 + $0x4] ss:$8 sps:$4 sm:$0xff]   ;;  %v1664_v8 = vld [vmem:[%s2116_s0 + $0xd4] ss:$8 sps:$4 sm:$0xff]   ;;  %v1659_v19 = vld [vmem:[%s2116_s0] ss:$8 sps:$4 sm:$0xff]  }
   0x4   :  { %579 = vmatprep.mubr.bf16.mxu0 %v1661_v6  ;;  %683 = vmatprep.mubr.bf16.mxu1 %v1664_v8  ;;  %v1649_v9 = vld [vmem:[%s2115_s1 + $0x30] sm:$0xff]   ;;  %v1650_v10 = vld [vmem:[%s2115_s1 + $0x38] sm:$0xff]   ;;  %v1651_v11 = vld [vmem:[%s2115_s1 + $0x40] sm:$0xff]  }
   0x5   :  { %v1652_v12 = vld [vmem:[%s2115_s1 + $0x48] sm:$0xff]   ;;  %v1653_v13 = vld [vmem:[%s2115_s1 + $0x50] sm:$0xff]   ;;  %v1654_v14 = vld [vmem:[%s2115_s1 + $0x58] sm:$0xff]  }
   0x6   :  { %550 = vmatpush1.bf16.msra.mxu0 %v1644_v2  ;;  %1627 = vmatpush1.bf16.msra.mxu1 %v1644_v2  ;;  %v1655_v15 = vld [vmem:[%s2115_s1 + $0x60] sm:$0xff]   ;;  %v1656_v16 = vld [vmem:[%s2115_s1 + $0x68] sm:$0xff]   ;;  %v1657_v17 = vld [vmem:[%s2115_s1 + $0x70] sm:$0xff]  }
   0x7   :  { %551 = vmatprep.subr.bf16.mxu0 %v1734_v0  ;;  %1612 = vmatprep.subr.bf16.mxu1 %v1734_v0  ;;  %v1658_v18 = vld [vmem:[%s2115_s1 + $0x78] sm:$0xff]   ;;  %v1668_v22 = vld [vmem:[%s2116_s0 + $0xe4] ss:$8 sps:$4 sm:$0xff]   ;;  %v1670_v24 = vld [vmem:[%s2116_s0 + $0xe0] ss:$8 sps:$4 sm:$0xff]  }
   0x8   :  { %v1662_v20 = vld [vmem:[%s2116_s0 + $0xd0] ss:$8 sps:$4 sm:$0xff]   ;;  %v1665_v21 = vld [vmem:[%s2116_s0 + $0x14] ss:$8 sps:$4 sm:$0xff]   ;;  %v1671_v25 = vld [vmem:[%s2116_s0 + $0x24] ss:$8 sps:$4 sm:$0xff]  }
   0x9   :  { %v1667_v23 = vld [vmem:[%s2116_s0 + $0x10] ss:$8 sps:$4 sm:$0xff]   ;;  %v1674_v26 = vld [vmem:[%s2116_s0 + $0xf4] ss:$8 sps:$4 sm:$0xff]   ;;  %v1673_v27 = vld [vmem:[%s2116_s0 + $0x20] ss:$8 sps:$4 sm:$0xff]  }
   0xa   :  { %552 = vmatpush1.bf16.msra.mxu0 %v1645_v3  ;;  %1628 = vmatpush1.bf16.msra.mxu1 %v1645_v3  ;;  %v1676_v28 = vld [vmem:[%s2116_s0 + $0xf0] ss:$8 sps:$4 sm:$0xff]   ;;  %v1677_v29 = vld [vmem:[%s2116_s0 + $0x34] ss:$8 sps:$4 sm:$0xff]   ;;  %v1680_v30 = vld [vmem:[%s2116_s0 + $0x104] ss:$8 sps:$4 sm:$0xff]  }
   0xb   :  { %553 = vmatprep.subr.bf16.mxu0 %v1734_v0  ;;  %1613 = vmatprep.subr.bf16.mxu1 %v1734_v0  ;;  %v1679_v31 = vld [vmem:[%s2116_s0 + $0x30] ss:$8 sps:$4 sm:$0xff]   ;;  %v1682_v32 = vld [vmem:[%s2116_s0 + $0x100] ss:$8 sps:$4 sm:$0xff]   ;;  %v1683_v33 = vld [vmem:[%s2116_s0 + $0x44] ss:$8 sps:$4 sm:$0xff]  }
   0xc   :  { %v1686_v34 = vld [vmem:[%s2116_s0 + $0x114] ss:$8 sps:$4 sm:$0xff]   ;;  %v1685_v35 = vld [vmem:[%s2116_s0 + $0x40] ss:$8 sps:$4 sm:$0xff]   ;;  %v1688_v36 = vld [vmem:[%s2116_s0 + $0x110] ss:$8 sps:$4 sm:$0xff]  }
   0xd   :  { %v1689_v37 = vld [vmem:[%s2116_s0 + $0x54] ss:$8 sps:$4 sm:$0xff]   ;;  %v1692_v38 = vld [vmem:[%s2116_s0 + $0x124] ss:$8 sps:$4 sm:$0xff]   ;;  %v1691_v39 = vld [vmem:[%s2116_s0 + $0x50] ss:$8 sps:$4 sm:$0xff]  }
   0xe   :  { %554 = vmatpush1.bf16.msra.mxu0 %v1646_v4  ;;  %1629 = vmatpush1.bf16.msra.mxu1 %v1646_v4  ;;  %v1694_v40 = vld [vmem:[%s2116_s0 + $0x120] ss:$8 sps:$4 sm:$0xff]   ;;  %v1695_v41 = vld [vmem:[%s2116_s0 + $0x64] ss:$8 sps:$4 sm:$0xff]   ;;  %v1698_v42 = vld [vmem:[%s2116_s0 + $0x134] ss:$8 sps:$4 sm:$0xff]  }
   0xf   :  { %555 = vmatprep.subr.bf16.mxu0 %v1734_v0  ;;  %1614 = vmatprep.subr.bf16.mxu1 %v1734_v0  ;;  %v1697_v43 = vld [vmem:[%s2116_s0 + $0x60] ss:$8 sps:$4 sm:$0xff]   ;;  %v1700_v44 = vld [vmem:[%s2116_s0 + $0x130] ss:$8 sps:$4 sm:$0xff]   ;;  %v1701_v45 = vld [vmem:[%s2116_s0 + $0x74] ss:$8 sps:$4 sm:$0xff]  }
  0x10   :  { %v1704_v46 = vld [vmem:[%s2116_s0 + $0x144] ss:$8 sps:$4 sm:$0xff]   ;;  %v1703_v47 = vld [vmem:[%s2116_s0 + $0x70] ss:$8 sps:$4 sm:$0xff]   ;;  %v1706_v48 = vld [vmem:[%s2116_s0 + $0x140] ss:$8 sps:$4 sm:$0xff]  }
  0x11   :  { %v1707_v49 = vld [vmem:[%s2116_s0 + $0x84] ss:$8 sps:$4 sm:$0xff]   ;;  %v1710_v50 = vld [vmem:[%s2116_s0 + $0x154] ss:$8 sps:$4 sm:$0xff]   ;;  %v1709_v51 = vld [vmem:[%s2116_s0 + $0x80] ss:$8 sps:$4 sm:$0xff]  }
  0x12   :  { %556 = vmatpush1.bf16.msra.mxu0 %v1647_v5  ;;  %1630 = vmatpush1.bf16.msra.mxu1 %v1647_v5  ;;  %v1712_v52 = vld [vmem:[%s2116_s0 + $0x150] ss:$8 sps:$4 sm:$0xff]   ;;  %v1713_v53 = vld [vmem:[%s2116_s0 + $0x94] ss:$8 sps:$4 sm:$0xff]   ;;  %v1716_v54 = vld [vmem:[%s2116_s0 + $0x164] ss:$8 sps:$4 sm:$0xff]  }
  0x13   :  { %557 = vmatprep.subr.bf16.mxu0 %v1734_v0  ;;  %1615 = vmatprep.subr.bf16.mxu1 %v1734_v0  ;;  %v1715_v55 = vld [vmem:[%s2116_s0 + $0x90] ss:$8 sps:$4 sm:$0xff]   ;;  %v1718_v56 = vld [vmem:[%s2116_s0 + $0x160] ss:$8 sps:$4 sm:$0xff]   ;;  %v1719_v57 = vld [vmem:[%s2116_s0 + $0xa4] ss:$8 sps:$4 sm:$0xff]  }
  0x14   :  { %v1722_v58 = vld [vmem:[%s2116_s0 + $0x174] ss:$8 sps:$4 sm:$0xff]   ;;  %v1721_v59 = vld [vmem:[%s2116_s0 + $0xa0] ss:$8 sps:$4 sm:$0xff]   ;;  %v1724_v60 = vld [vmem:[%s2116_s0 + $0x170] ss:$8 sps:$4 sm:$0xff]  }
  0x15   :  { %v1725_v61 = vld [vmem:[%s2116_s0 + $0xb4] ss:$8 sps:$4 sm:$0xff]   ;;  %v1728_v62 = vld [vmem:[%s2116_s0 + $0x184] ss:$8 sps:$4 sm:$0xff]   ;;  %v1727_v63 = vld [vmem:[%s2116_s0 + $0xb0] ss:$8 sps:$4 sm:$0xff]  }
  0x16   :  { %558 = vmatpush1.bf16.msra.mxu0 %v1648_v7  ;;  %1631 = vmatpush1.bf16.msra.mxu1 %v1648_v7  ;;  %v1731_v1 = vld [vmem:[%s2116_s0 + $0xc4] ss:$8 sps:$4 sm:$0xff]   ;;  %v1733_v2 = vld [vmem:[%s2116_s0 + $0xc0] ss:$8 sps:$4 sm:$0xff]  }
  0x17   :  { %559 = vmatprep.subr.bf16.mxu0 %v1734_v0  ;;  %1616 = vmatprep.subr.bf16.mxu1 %v1734_v0  ;;  %v1988_v3 = vld [vmem:[%s2117_s2] ss:$0 sm:$0xff] }
  0x1a   :  { %560 = vmatpush1.bf16.msra.mxu0 %v1649_v9  ;;  %1632 = vmatpush1.bf16.msra.mxu1 %v1649_v9 }
  0x1b   :  { %561 = vmatprep.subr.bf16.mxu0 %v1734_v0  ;;  %1617 = vmatprep.subr.bf16.mxu1 %v1734_v0 }
  0x1e   :  { %562 = vmatpush1.bf16.msra.mxu0 %v1650_v10  ;;  %1633 = vmatpush1.bf16.msra.mxu1 %v1650_v10 }
  0x1f   :  { %563 = vmatprep.subr.bf16.mxu0 %v1734_v0  ;;  %1618 = vmatprep.subr.bf16.mxu1 %v1734_v0 }
  0x22   :  { %564 = vmatpush1.bf16.msra.mxu0 %v1651_v11  ;;  %1634 = vmatpush1.bf16.msra.mxu1 %v1651_v11 }
  0x23   :  { %565 = vmatprep.subr.bf16.mxu0 %v1734_v0  ;;  %1619 = vmatprep.subr.bf16.mxu1 %v1734_v0 }
  0x26   :  { %566 = vmatpush1.bf16.msra.mxu0 %v1652_v12  ;;  %1635 = vmatpush1.bf16.msra.mxu1 %v1652_v12 }
  0x27   :  { %567 = vmatprep.subr.bf16.mxu0 %v1734_v0  ;;  %1620 = vmatprep.subr.bf16.mxu1 %v1734_v0 }
  0x2a   :  { %568 = vmatpush1.bf16.msra.mxu0 %v1653_v13  ;;  %1636 = vmatpush1.bf16.msra.mxu1 %v1653_v13 }
  0x2b   :  { %569 = vmatprep.subr.bf16.mxu0 %v1734_v0  ;;  %1621 = vmatprep.subr.bf16.mxu1 %v1734_v0 }
  0x2e   :  { %570 = vmatpush1.bf16.msra.mxu0 %v1654_v14  ;;  %1637 = vmatpush1.bf16.msra.mxu1 %v1654_v14 }
  0x2f   :  { %571 = vmatprep.subr.bf16.mxu0 %v1734_v0  ;;  %1622 = vmatprep.subr.bf16.mxu1 %v1734_v0 }
  0x32   :  { %572 = vmatpush1.bf16.msra.mxu0 %v1655_v15  ;;  %1638 = vmatpush1.bf16.msra.mxu1 %v1655_v15 }
  0x33   :  { %573 = vmatprep.subr.bf16.mxu0 %v1734_v0  ;;  %1623 = vmatprep.subr.bf16.mxu1 %v1734_v0 }
  0x36   :  { %574 = vmatpush1.bf16.msra.mxu0 %v1656_v16  ;;  %1639 = vmatpush1.bf16.msra.mxu1 %v1656_v16 }
  0x37   :  { %575 = vmatprep.subr.bf16.mxu0 %v1734_v0  ;;  %1624 = vmatprep.subr.bf16.mxu1 %v1734_v0 }
  0x3a   :  { %576 = vmatpush1.bf16.msra.mxu0 %v1657_v17  ;;  %1640 = vmatpush1.bf16.msra.mxu1 %v1657_v17 }
  0x3b   :  { %577 = vmatprep.subr.bf16.mxu0 %v1734_v0  ;;  %1625 = vmatprep.subr.bf16.mxu1 %v1734_v0  ;;  %v1730_v0 = vld [vmem:[%s2116_s0 + $0x180] ss:$8 sps:$4 sm:$0xff]  }
  0x3e   :  { %578 = vmatpush1.bf16.msra.mxu0 %v1658_v18  ;;  %1641 = vmatpush1.bf16.msra.mxu1 %v1658_v18 }
  0x41   :  { %580 = vmatmul.mubr.bf16.vlgmr.msra.gmra.mrb[0].mxu0 %v1659_v19  ;;  %684 = vmatmul.mubr.bf16.vlgmr.msra.gmra.mrb[0].mxu1 %v1662_v20 }
  0x42   :  { %587 = vmatprep.mubr.bf16.mxu0 %v1665_v21  ;;  %691 = vmatprep.mubr.bf16.mxu1 %v1668_v22 }
  0x49   :  { %588 = vmatmul.mubr.bf16.gmra.mrb[4].mxu0 %v1667_v23  ;;  %692 = vmatmul.mubr.bf16.gmra.mrb[4].mxu1 %v1670_v24 }
  0x4a   :  { %595 = vmatprep.mubr.bf16.mxu0 %v1671_v25  ;;  %699 = vmatprep.mubr.bf16.mxu1 %v1674_v26 }
  0x51   :  { %596 = vmatmul.mubr.bf16.gmra.mrb[8].mxu0 %v1673_v27  ;;  %700 = vmatmul.mubr.bf16.gmra.mrb[8].mxu1 %v1676_v28 }
  0x52   :  { %603 = vmatprep.mubr.bf16.mxu0 %v1677_v29  ;;  %707 = vmatprep.mubr.bf16.mxu1 %v1680_v30 }
  0x59   :  { %604 = vmatmul.mubr.bf16.gmra.mrb[12].mxu0 %v1679_v31  ;;  %708 = vmatmul.mubr.bf16.gmra.mrb[12].mxu1 %v1682_v32 }
  0x5a   :  { %611 = vmatprep.mubr.bf16.mxu0 %v1683_v33  ;;  %715 = vmatprep.mubr.bf16.mxu1 %v1686_v34 }
  0x61   :  { %612 = vmatmul.mubr.bf16.gmra.mrb[16].mxu0 %v1685_v35  ;;  %716 = vmatmul.mubr.bf16.gmra.mrb[16].mxu1 %v1688_v36 }
  0x62   :  { %619 = vmatprep.mubr.bf16.mxu0 %v1689_v37  ;;  %723 = vmatprep.mubr.bf16.mxu1 %v1692_v38 }
  0x69   :  { %620 = vmatmul.mubr.bf16.gmra.mrb[20].mxu0 %v1691_v39  ;;  %724 = vmatmul.mubr.bf16.gmra.mrb[20].mxu1 %v1694_v40 }
  0x6a   :  { %627 = vmatprep.mubr.bf16.mxu0 %v1695_v41  ;;  %731 = vmatprep.mubr.bf16.mxu1 %v1698_v42 }
  0x71   :  { %628 = vmatmul.mubr.bf16.gmra.mrb[24].mxu0 %v1697_v43  ;;  %732 = vmatmul.mubr.bf16.gmra.mrb[24].mxu1 %v1700_v44 }
  0x72   :  { %635 = vmatprep.mubr.bf16.mxu0 %v1701_v45  ;;  %739 = vmatprep.mubr.bf16.mxu1 %v1704_v46 }
  0x79   :  { %636 = vmatmul.mubr.bf16.gmra.mrb[28].mxu0 %v1703_v47  ;;  %740 = vmatmul.mubr.bf16.gmra.mrb[28].mxu1 %v1706_v48 }
  0x7a   :  { %643 = vmatprep.mubr.bf16.mxu0 %v1707_v49  ;;  %747 = vmatprep.mubr.bf16.mxu1 %v1710_v50 }
  0x81   :  { %644 = vmatmul.mubr.bf16.gmra.mrb[32].mxu0 %v1709_v51  ;;  %748 = vmatmul.mubr.bf16.gmra.mrb[32].mxu1 %v1712_v52 }
  0x82   :  { %651 = vmatprep.mubr.bf16.mxu0 %v1713_v53  ;;  %755 = vmatprep.mubr.bf16.mxu1 %v1716_v54 }
  0x89   :  { %652 = vmatmul.mubr.bf16.gmra.mrb[36].mxu0 %v1715_v55  ;;  %756 = vmatmul.mubr.bf16.gmra.mrb[36].mxu1 %v1718_v56 }
  0x8a   :  { %659 = vmatprep.mubr.bf16.mxu0 %v1719_v57  ;;  %763 = vmatprep.mubr.bf16.mxu1 %v1722_v58 }
  0x91   :  { %660 = vmatmul.mubr.bf16.gmra.mrb[40].mxu0 %v1721_v59  ;;  %764 = vmatmul.mubr.bf16.gmra.mrb[40].mxu1 %v1724_v60 }
  0x92   :  { %667 = vmatprep.mubr.bf16.mxu0 %v1725_v61  ;;  %771 = vmatprep.mubr.bf16.mxu1 %v1728_v62 }
  0x99   :  { %668 = vmatmul.mubr.bf16.gmra.mrb[44].mxu0 %v1727_v63  ;;  %772 = vmatmul.mubr.bf16.gmra.mrb[44].mxu1 %v1730_v0 }
  0x9a   :  { %675 = vmatprep.mubr.bf16.mxu0 %v1731_v1 }
  0xa1   :  { %676 = vmatmul.mubr.bf16.gmra.mrb[48].mxu0 %v1733_v2 }
 0x114   :  { %v581_v4 = vpop.f32.mrb[0].mxu0  ;;  %v685_v5 = vpop.f32.mrb[0].mxu1 }
 0x115   :  { %v940_v6 = vadd.f32 %v1988_v3, %v581_v4  ;;  %v583_v7 = vpop.f32.mrb[1].mxu0  ;;  %v966_v8 = vadd.f32 %v1988_v3, %v685_v5  ;;  %v687_v9 = vpop.f32.mrb[1].mxu1 }
 0x116   :  { %v584_v10 = vpop.f32.mrb[2].mxu0  ;;  %v688_v11 = vpop.f32.mrb[2].mxu1 }
 0x117   :  { %v941_v12 = vadd.f32 %v1988_v3, %v584_v10  ;;  %v586_v13 = vpop.f32.mrb[3].mxu0  ;;  %v1016_v14 = vmax.f32 %v966_v8, 0.0  ;;  %v967_v15 = vadd.f32 %v1988_v3, %v688_v11  ;;  %v690_v16 = vpop.f32.mrb[3].mxu1  ;;  %v990_v17 = vmax.f32 %v940_v6, 0.0 }
 0x119   :  { %v991_v18 = vmax.f32 %v941_v12, 0.0  ;;  %v1017_v19 = vmax.f32 %v967_v15, 0.0 }
 0x11b   :  { %v1464_v20 = vpack.c.bf16 %v991_v18, %v990_v17  ;;  %v1529_v21 = vpack.c.bf16 %v1017_v19, %v1016_v14 }
 0x11c   :  { %v589_v22 = vpop.f32.mrb[4].mxu0  ;;  %v693_v23 = vpop.f32.mrb[4].mxu1 }
 0x11d   :  { %1465 = vst [vmem:[%s2118_s3] sm:$0xff] %v1464_v20   ;;  %1598 = vst [vmem:[%s2118_s3 + $0x68] sm:$0xff] %v1529_v21   ;;  %v942_v24 = vadd.f32 %v1988_v3, %v589_v22  ;;  %v591_v25 = vpop.f32.mrb[5].mxu0  ;;  %v968_v26 = vadd.f32 %v1988_v3, %v693_v23  ;;  %v695_v27 = vpop.f32.mrb[5].mxu1 }
 0x11e   :  { %v592_v28 = vpop.f32.mrb[6].mxu0  ;;  %v696_v29 = vpop.f32.mrb[6].mxu1 }
 0x11f   :  { %v943_v30 = vadd.f32 %v1988_v3, %v592_v28  ;;  %v594_v31 = vpop.f32.mrb[7].mxu0  ;;  %v1018_v32 = vmax.f32 %v968_v26, 0.0  ;;  %v969_v33 = vadd.f32 %v1988_v3, %v696_v29  ;;  %v698_v34 = vpop.f32.mrb[7].mxu1  ;;  %v992_v35 = vmax.f32 %v942_v24, 0.0 }
 0x121   :  { %v993_v36 = vmax.f32 %v943_v30, 0.0  ;;  %v1019_v37 = vmax.f32 %v969_v33, 0.0 }
 0x123   :  { %v1469_v38 = vpack.c.bf16 %v993_v36, %v992_v35  ;;  %v1534_v39 = vpack.c.bf16 %v1019_v37, %v1018_v32 }
 0x124   :  { %v597_v40 = vpop.f32.mrb[8].mxu0  ;;  %v701_v41 = vpop.f32.mrb[8].mxu1 }
 0x125   :  { %1586 = vst [vmem:[%s2118_s3 + $0x8] sm:$0xff] %v1469_v38   ;;  %1599 = vst [vmem:[%s2118_s3 + $0x70] sm:$0xff] %v1534_v39   ;;  %v944_v42 = vadd.f32 %v1988_v3, %v597_v40  ;;  %v599_v43 = vpop.f32.mrb[9].mxu0  ;;  %v970_v44 = vadd.f32 %v1988_v3, %v701_v41  ;;  %v703_v45 = vpop.f32.mrb[9].mxu1 }
 0x126   :  { %v600_v46 = vpop.f32.mrb[10].mxu0  ;;  %v704_v47 = vpop.f32.mrb[10].mxu1 }
 0x127   :  { %v945_v48 = vadd.f32 %v1988_v3, %v600_v46  ;;  %v602_v49 = vpop.f32.mrb[11].mxu0  ;;  %v1020_v50 = vmax.f32 %v970_v44, 0.0  ;;  %v971_v51 = vadd.f32 %v1988_v3, %v704_v47  ;;  %v706_v52 = vpop.f32.mrb[11].mxu1  ;;  %v994_v53 = vmax.f32 %v944_v42, 0.0 }
 0x129   :  { %v995_v54 = vmax.f32 %v945_v48, 0.0  ;;  %v1021_v55 = vmax.f32 %v971_v51, 0.0 }
 0x12b   :  { %v1474_v56 = vpack.c.bf16 %v995_v54, %v994_v53  ;;  %v1539_v57 = vpack.c.bf16 %v1021_v55, %v1020_v50 }
 0x12c   :  { %v605_v58 = vpop.f32.mrb[12].mxu0  ;;  %v709_v59 = vpop.f32.mrb[12].mxu1 }
 0x12d   :  { %1587 = vst [vmem:[%s2118_s3 + $0x10] sm:$0xff] %v1474_v56   ;;  %1600 = vst [vmem:[%s2118_s3 + $0x78] sm:$0xff] %v1539_v57   ;;  %v946_v60 = vadd.f32 %v1988_v3, %v605_v58  ;;  %v607_v61 = vpop.f32.mrb[13].mxu0  ;;  %v972_v62 = vadd.f32 %v1988_v3, %v709_v59  ;;  %v711_v63 = vpop.f32.mrb[13].mxu1 }
 0x12e   :  { %v608_v0 = vpop.f32.mrb[14].mxu0  ;;  %v712_v1 = vpop.f32.mrb[14].mxu1 }
 0x12f   :  { %v947_v2 = vadd.f32 %v1988_v3, %v608_v0  ;;  %v610_v4 = vpop.f32.mrb[15].mxu0  ;;  %v1022_v5 = vmax.f32 %v972_v62, 0.0  ;;  %v973_v6 = vadd.f32 %v1988_v3, %v712_v1  ;;  %v714_v7 = vpop.f32.mrb[15].mxu1  ;;  %v996_v8 = vmax.f32 %v946_v60, 0.0 }
 0x131   :  { %v997_v9 = vmax.f32 %v947_v2, 0.0  ;;  %v1023_v10 = vmax.f32 %v973_v6, 0.0 }
 0x133   :  { %v1479_v11 = vpack.c.bf16 %v997_v9, %v996_v8  ;;  %v1544_v12 = vpack.c.bf16 %v1023_v10, %v1022_v5 }
 0x134   :  { %v613_v13 = vpop.f32.mrb[16].mxu0  ;;  %v717_v14 = vpop.f32.mrb[16].mxu1 }
 0x135   :  { %1588 = vst [vmem:[%s2118_s3 + $0x18] sm:$0xff] %v1479_v11   ;;  %1601 = vst [vmem:[%s2118_s3 + $0x80] sm:$0xff] %v1544_v12   ;;  %v948_v15 = vadd.f32 %v1988_v3, %v613_v13  ;;  %v615_v16 = vpop.f32.mrb[17].mxu0  ;;  %v974_v17 = vadd.f32 %v1988_v3, %v717_v14  ;;  %v719_v18 = vpop.f32.mrb[17].mxu1 }
 0x136   :  { %v616_v19 = vpop.f32.mrb[18].mxu0  ;;  %v720_v20 = vpop.f32.mrb[18].mxu1 }
 0x137   :  { %v949_v21 = vadd.f32 %v1988_v3, %v616_v19  ;;  %v618_v22 = vpop.f32.mrb[19].mxu0  ;;  %v1024_v23 = vmax.f32 %v974_v17, 0.0  ;;  %v975_v24 = vadd.f32 %v1988_v3, %v720_v20  ;;  %v722_v25 = vpop.f32.mrb[19].mxu1  ;;  %v998_v26 = vmax.f32 %v948_v15, 0.0 }
 0x139   :  { %v999_v27 = vmax.f32 %v949_v21, 0.0  ;;  %v1025_v28 = vmax.f32 %v975_v24, 0.0 }
 0x13b   :  { %v1484_v29 = vpack.c.bf16 %v999_v27, %v998_v26  ;;  %v1549_v30 = vpack.c.bf16 %v1025_v28, %v1024_v23 }
 0x13c   :  { %v621_v31 = vpop.f32.mrb[20].mxu0  ;;  %v725_v32 = vpop.f32.mrb[20].mxu1 }
 0x13d   :  { %1589 = vst [vmem:[%s2118_s3 + $0x20] sm:$0xff] %v1484_v29   ;;  %1602 = vst [vmem:[%s2118_s3 + $0x88] sm:$0xff] %v1549_v30   ;;  %v950_v33 = vadd.f32 %v1988_v3, %v621_v31  ;;  %v623_v34 = vpop.f32.mrb[21].mxu0  ;;  %v976_v35 = vadd.f32 %v1988_v3, %v725_v32  ;;  %v727_v36 = vpop.f32.mrb[21].mxu1 }
 0x13e   :  { %v624_v37 = vpop.f32.mrb[22].mxu0  ;;  %v728_v38 = vpop.f32.mrb[22].mxu1 }
 0x13f   :  { %v951_v39 = vadd.f32 %v1988_v3, %v624_v37  ;;  %v626_v40 = vpop.f32.mrb[23].mxu0  ;;  %v1026_v41 = vmax.f32 %v976_v35, 0.0  ;;  %v977_v42 = vadd.f32 %v1988_v3, %v728_v38  ;;  %v730_v43 = vpop.f32.mrb[23].mxu1  ;;  %v1000_v44 = vmax.f32 %v950_v33, 0.0 }
 0x141   :  { %v1001_v45 = vmax.f32 %v951_v39, 0.0  ;;  %v1027_v46 = vmax.f32 %v977_v42, 0.0 }
 0x143   :  { %v1489_v47 = vpack.c.bf16 %v1001_v45, %v1000_v44  ;;  %v1554_v48 = vpack.c.bf16 %v1027_v46, %v1026_v41 }
 0x144   :  { %v629_v49 = vpop.f32.mrb[24].mxu0  ;;  %v733_v50 = vpop.f32.mrb[24].mxu1 }
 0x145   :  { %1590 = vst [vmem:[%s2118_s3 + $0x28] sm:$0xff] %v1489_v47   ;;  %1603 = vst [vmem:[%s2118_s3 + $0x90] sm:$0xff] %v1554_v48   ;;  %v952_v51 = vadd.f32 %v1988_v3, %v629_v49  ;;  %v631_v52 = vpop.f32.mrb[25].mxu0  ;;  %v978_v53 = vadd.f32 %v1988_v3, %v733_v50  ;;  %v735_v54 = vpop.f32.mrb[25].mxu1 }
 0x146   :  { %v632_v55 = vpop.f32.mrb[26].mxu0  ;;  %v736_v56 = vpop.f32.mrb[26].mxu1 }
 0x147   :  { %v953_v57 = vadd.f32 %v1988_v3, %v632_v55  ;;  %v634_v58 = vpop.f32.mrb[27].mxu0  ;;  %v1028_v59 = vmax.f32 %v978_v53, 0.0  ;;  %v979_v60 = vadd.f32 %v1988_v3, %v736_v56  ;;  %v738_v61 = vpop.f32.mrb[27].mxu1  ;;  %v1002_v62 = vmax.f32 %v952_v51, 0.0 }
 0x149   :  { %v1003_v63 = vmax.f32 %v953_v57, 0.0  ;;  %v1029_v0 = vmax.f32 %v979_v60, 0.0 }
 0x14b   :  { %v1494_v1 = vpack.c.bf16 %v1003_v63, %v1002_v62  ;;  %v1559_v2 = vpack.c.bf16 %v1029_v0, %v1028_v59 }
 0x14c   :  { %v637_v4 = vpop.f32.mrb[28].mxu0  ;;  %v741_v5 = vpop.f32.mrb[28].mxu1 }
 0x14d   :  { %1591 = vst [vmem:[%s2118_s3 + $0x30] sm:$0xff] %v1494_v1   ;;  %1604 = vst [vmem:[%s2118_s3 + $0x98] sm:$0xff] %v1559_v2   ;;  %v954_v6 = vadd.f32 %v1988_v3, %v637_v4  ;;  %v639_v7 = vpop.f32.mrb[29].mxu0  ;;  %v980_v8 = vadd.f32 %v1988_v3, %v741_v5  ;;  %v743_v9 = vpop.f32.mrb[29].mxu1 }
 0x14e   :  { %v640_v10 = vpop.f32.mrb[30].mxu0  ;;  %v744_v11 = vpop.f32.mrb[30].mxu1 }
 0x14f   :  { %v955_v12 = vadd.f32 %v1988_v3, %v640_v10  ;;  %v642_v13 = vpop.f32.mrb[31].mxu0  ;;  %v1030_v14 = vmax.f32 %v980_v8, 0.0  ;;  %v981_v15 = vadd.f32 %v1988_v3, %v744_v11  ;;  %v746_v16 = vpop.f32.mrb[31].mxu1  ;;  %v1004_v17 = vmax.f32 %v954_v6, 0.0 }
 0x151   :  { %v1005_v18 = vmax.f32 %v955_v12, 0.0  ;;  %v1031_v19 = vmax.f32 %v981_v15, 0.0 }
 0x153   :  { %v1499_v20 = vpack.c.bf16 %v1005_v18, %v1004_v17  ;;  %v1564_v21 = vpack.c.bf16 %v1031_v19, %v1030_v14 }
 0x154   :  { %v645_v22 = vpop.f32.mrb[32].mxu0  ;;  %v749_v23 = vpop.f32.mrb[32].mxu1 }
 0x155   :  { %1592 = vst [vmem:[%s2118_s3 + $0x38] sm:$0xff] %v1499_v20   ;;  %1605 = vst [vmem:[%s2118_s3 + $0xa0] sm:$0xff] %v1564_v21   ;;  %v956_v24 = vadd.f32 %v1988_v3, %v645_v22  ;;  %v647_v25 = vpop.f32.mrb[33].mxu0  ;;  %v982_v26 = vadd.f32 %v1988_v3, %v749_v23  ;;  %v751_v27 = vpop.f32.mrb[33].mxu1 }
 0x156   :  { %v648_v28 = vpop.f32.mrb[34].mxu0  ;;  %v752_v29 = vpop.f32.mrb[34].mxu1 }
 0x157   :  { %v957_v30 = vadd.f32 %v1988_v3, %v648_v28  ;;  %v650_v31 = vpop.f32.mrb[35].mxu0  ;;  %v1032_v32 = vmax.f32 %v982_v26, 0.0  ;;  %v983_v33 = vadd.f32 %v1988_v3, %v752_v29  ;;  %v754_v34 = vpop.f32.mrb[35].mxu1  ;;  %v1006_v35 = vmax.f32 %v956_v24, 0.0 }
 0x159   :  { %v1007_v36 = vmax.f32 %v957_v30, 0.0  ;;  %v1033_v37 = vmax.f32 %v983_v33, 0.0 }
 0x15b   :  { %v1504_v38 = vpack.c.bf16 %v1007_v36, %v1006_v35  ;;  %v1569_v39 = vpack.c.bf16 %v1033_v37, %v1032_v32 }
 0x15c   :  { %v653_v40 = vpop.f32.mrb[36].mxu0  ;;  %v757_v41 = vpop.f32.mrb[36].mxu1 }
 0x15d   :  { %1593 = vst [vmem:[%s2118_s3 + $0x40] sm:$0xff] %v1504_v38   ;;  %1606 = vst [vmem:[%s2118_s3 + $0xa8] sm:$0xff] %v1569_v39   ;;  %v958_v42 = vadd.f32 %v1988_v3, %v653_v40  ;;  %v655_v43 = vpop.f32.mrb[37].mxu0  ;;  %v984_v44 = vadd.f32 %v1988_v3, %v757_v41  ;;  %v759_v45 = vpop.f32.mrb[37].mxu1 }
 0x15e   :  { %v656_v46 = vpop.f32.mrb[38].mxu0  ;;  %v760_v47 = vpop.f32.mrb[38].mxu1 }
 0x15f   :  { %v959_v48 = vadd.f32 %v1988_v3, %v656_v46  ;;  %v658_v49 = vpop.f32.mrb[39].mxu0  ;;  %v1034_v50 = vmax.f32 %v984_v44, 0.0  ;;  %v985_v51 = vadd.f32 %v1988_v3, %v760_v47  ;;  %v762_v52 = vpop.f32.mrb[39].mxu1  ;;  %v1008_v53 = vmax.f32 %v958_v42, 0.0 }
 0x161   :  { %v1009_v54 = vmax.f32 %v959_v48, 0.0  ;;  %v1035_v55 = vmax.f32 %v985_v51, 0.0 }
 0x163   :  { %v1509_v56 = vpack.c.bf16 %v1009_v54, %v1008_v53  ;;  %v1574_v57 = vpack.c.bf16 %v1035_v55, %v1034_v50 }
 0x164   :  { %v661_v58 = vpop.f32.mrb[40].mxu0  ;;  %v765_v59 = vpop.f32.mrb[40].mxu1 }
 0x165   :  { %1594 = vst [vmem:[%s2118_s3 + $0x48] sm:$0xff] %v1509_v56   ;;  %1607 = vst [vmem:[%s2118_s3 + $0xb0] sm:$0xff] %v1574_v57   ;;  %v960_v60 = vadd.f32 %v1988_v3, %v661_v58  ;;  %v663_v61 = vpop.f32.mrb[41].mxu0  ;;  %v986_v62 = vadd.f32 %v1988_v3, %v765_v59  ;;  %v767_v63 = vpop.f32.mrb[41].mxu1 }
 0x166   :  { %v664_v0 = vpop.f32.mrb[42].mxu0  ;;  %v768_v1 = vpop.f32.mrb[42].mxu1 }
 0x167   :  { %v961_v2 = vadd.f32 %v1988_v3, %v664_v0  ;;  %v666_v4 = vpop.f32.mrb[43].mxu0  ;;  %v1036_v5 = vmax.f32 %v986_v62, 0.0  ;;  %v987_v6 = vadd.f32 %v1988_v3, %v768_v1  ;;  %v770_v7 = vpop.f32.mrb[43].mxu1  ;;  %v1010_v8 = vmax.f32 %v960_v60, 0.0 }
 0x169   :  { %v1011_v9 = vmax.f32 %v961_v2, 0.0  ;;  %v1037_v10 = vmax.f32 %v987_v6, 0.0 }
 0x16b   :  { %v1514_v11 = vpack.c.bf16 %v1011_v9, %v1010_v8  ;;  %v1579_v12 = vpack.c.bf16 %v1037_v10, %v1036_v5 }
 0x16c   :  { %v669_v13 = vpop.f32.mrb[44].mxu0  ;;  %v773_v14 = vpop.f32.mrb[44].mxu1 }
 0x16d   :  { %1595 = vst [vmem:[%s2118_s3 + $0x50] sm:$0xff] %v1514_v11   ;;  %1608 = vst [vmem:[%s2118_s3 + $0xb8] sm:$0xff] %v1579_v12   ;;  %v962_v15 = vadd.f32 %v1988_v3, %v669_v13  ;;  %v671_v16 = vpop.f32.mrb[45].mxu0  ;;  %v988_v17 = vadd.f32 %v1988_v3, %v773_v14  ;;  %v775_v18 = vpop.f32.mrb[45].mxu1 }
 0x16e   :  { %v672_v19 = vpop.f32.mrb[46].mxu0  ;;  %v776_v20 = vpop.f32.mrb[46].mxu1 }
 0x16f   :  { %v963_v21 = vadd.f32 %v1988_v3, %v672_v19  ;;  %v674_v22 = vpop.f32.mrb[47].mxu0  ;;  %v1038_v23 = vmax.f32 %v988_v17, 0.0  ;;  %v989_v24 = vadd.f32 %v1988_v3, %v776_v20  ;;  %v778_v25 = vpop.f32.mrb[47].mxu1  ;;  %v1012_v26 = vmax.f32 %v962_v15, 0.0 }
 0x171   :  { %v1013_v27 = vmax.f32 %v963_v21, 0.0  ;;  %v1039_v28 = vmax.f32 %v989_v24, 0.0 }
 0x173   :  { %v1519_v29 = vpack.c.bf16 %v1013_v27, %v1012_v26  ;;  %v1584_v30 = vpack.c.bf16 %v1039_v28, %v1038_v23 }
 0x174   :  { %v677_v31 = vpop.f32.mrb[48].mxu0 }
 0x175   :  { %1596 = vst [vmem:[%s2118_s3 + $0x58] sm:$0xff] %v1519_v29   ;;  %1609 = vst [vmem:[%s2118_s3 + $0xc0] sm:$0xff] %v1584_v30   ;;  %v964_v32 = vadd.f32 %v1988_v3, %v677_v31  ;;  %v679_v33 = vpop.f32.mrb[49].mxu0 }
 0x176   :  { %v680_v34 = vpop.f32.mrb[50].mxu0 }
 0x177   :  { %v965_v35 = vadd.f32 %v1988_v3, %v680_v34  ;;  %v682_v36 = vpop.f32.mrb[51].mxu0  ;;  %v1014_v37 = vmax.f32 %v964_v32, 0.0 }
 0x179   :  { %v1015_v38 = vmax.f32 %v965_v35, 0.0 }
 0x17b   :  { %v1524_v39 = vpack.c.bf16 %v1015_v38, %v1014_v37 }
 0x17d   :  { %1597 = vst [vmem:[%s2118_s3 + $0x60] sm:$0xff] %v1524_v39  }

// kernel: simple_cnn_forward.9
= control target key start
LH: loop header
LB: loop body
LE: loop exit
PB: predicated region body
PF: predicated region fallthrough
CT: control target
= control target key end

     0   :  { %v997_v1 = vmov 0.0   ;;  %vm998_vm0 = vmmov 0   ;;  %s1216_s1 = inlined_call_operand.vmem [shape: bf16[384,128], index: 1, kind: input, shape index: {}]   ;;  %s1217_s0 = inlined_call_operand.vmem [shape: bf16[112,384], index: 0, kind: input, shape index: {}]   ;;  %s1218_s2 = inlined_call_operand.vmem [shape: f32[1,128], index: 2, kind: input, shape index: {}]   ;;  %s1219_s3 = inlined_call_operand.vmem [shape: bf16[112,128], index: 3, kind: output, shape index: {}]  }
   0x1   :  { %v945_v0 = vld [vmem:[%s1216_s1 + $0x40] sm:$0xff]   ;;  %899 = vmatprep.subr.bf16.mxu1 %v997_v1  ;;  %915 = vmatprep.mubr.msk.bf16.mxu1 %vm998_vm0, %v997_v1  ;;  %v948_v4 = vld [vmem:[%s1216_s1 + $0x48] sm:$0xff]   ;;  %v951_v7 = vld [vmem:[%s1216_s1 + $0x50] sm:$0xff]  }
   0x2   :  { %v946_v2 = vld [vmem:[%s1216_s1] sm:$0xff]   ;;  %826 = vmatprep.subr.bf16.mxu0 %v945_v0  ;;  %v949_v5 = vld [vmem:[%s1216_s1 + $0x8] sm:$0xff]   ;;  %v952_v8 = vld [vmem:[%s1216_s1 + $0x10] sm:$0xff]  }
   0x3   :  { %v947_v3 = vld [vmem:[%s1216_s1 + $0x80] sm:$0xff]   ;;  %827 = vmatpush3.bf16.msra.mxu0 %v946_v2  ;;  %v950_v6 = vld [vmem:[%s1216_s1 + $0x88] sm:$0xff]   ;;  %v953_v9 = vld [vmem:[%s1216_s1 + $0x90] sm:$0xff]  }
   0x4   :  { %900 = vmatpush3.bf16.msra.mxu1 %v947_v3  ;;  %828 = vmatprep.subr.bf16.mxu0 %v948_v4  ;;  %v954_v10 = vld [vmem:[%s1216_s1 + $0x58] sm:$0xff]   ;;  %v957_v13 = vld [vmem:[%s1216_s1 + $0x60] sm:$0xff]   ;;  %v960_v16 = vld [vmem:[%s1216_s1 + $0x68] sm:$0xff]  }
   0x5   :  { %901 = vmatprep.subr.bf16.mxu1 %v997_v1  ;;  %v955_v11 = vld [vmem:[%s1216_s1 + $0x18] sm:$0xff]   ;;  %v958_v14 = vld [vmem:[%s1216_s1 + $0x20] sm:$0xff]   ;;  %v961_v17 = vld [vmem:[%s1216_s1 + $0x28] sm:$0xff]  }
   0x6   :  { %v956_v12 = vld [vmem:[%s1216_s1 + $0x98] sm:$0xff]   ;;  %v959_v15 = vld [vmem:[%s1216_s1 + $0xa0] sm:$0xff]   ;;  %v962_v18 = vld [vmem:[%s1216_s1 + $0xa8] sm:$0xff]  }
   0x7   :  { %829 = vmatpush3.bf16.msra.mxu0 %v949_v5  ;;  %v963_v19 = vld [vmem:[%s1216_s1 + $0x70] sm:$0xff]   ;;  %v966_v22 = vld [vmem:[%s1216_s1 + $0x78] sm:$0xff]   ;;  %v969_v26 = vld [vmem:[%s1217_s0] ss:$12 sps:$4 sm:$0xff]  }
   0x8   :  { %902 = vmatpush3.bf16.msra.mxu1 %v950_v6  ;;  %830 = vmatprep.subr.bf16.mxu0 %v951_v7  ;;  %v964_v20 = vld [vmem:[%s1216_s1 + $0x30] sm:$0xff]   ;;  %v967_v24 = vld [vmem:[%s1216_s1 + $0x38] sm:$0xff]   ;;  %v976_v30 = vld [vmem:[%s1217_s0 + $0x20] ss:$12 sps:$4 sm:$0xff]  }
   0x9   :  { %903 = vmatprep.subr.bf16.mxu1 %v997_v1  ;;  %v965_v21 = vld [vmem:[%s1216_s1 + $0xb0] sm:$0xff]   ;;  %v968_v25 = vld [vmem:[%s1216_s1 + $0xb8] sm:$0xff]   ;;  %v987_v38 = vld [vmem:[%s1217_s0 + $0x60] ss:$12 sps:$4 sm:$0xff]  }
   0xa   :  { %v971_v23 = vld [vmem:[%s1217_s0 + $0x4] ss:$12 sps:$4 sm:$0xff]   ;;  %v972_v27 = vld [vmem:[%s1217_s0 + $0x8] ss:$12 sps:$4 sm:$0xff]   ;;  %v981_v34 = vld [vmem:[%s1217_s0 + $0x4c] ss:$12 sps:$4 sm:$0xff]  }
   0xb   :  { %831 = vmatpush3.bf16.msra.mxu0 %v952_v8  ;;  %411 = vmatprep.mubr.bf16.mxu0 %v971_v23  ;;  %v973_v28 = vld [vmem:[%s1217_s0 + $0x1c] ss:$12 sps:$4 sm:$0xff]   ;;  %v975_v29 = vld [vmem:[%s1217_s0 + $0x18] ss:$12 sps:$4 sm:$0xff]   ;;  %v977_v31 = vld [vmem:[%s1217_s0 + $0x34] ss:$12 sps:$4 sm:$0xff]  }
   0xc   :  { %904 = vmatpush3.bf16.msra.mxu1 %v953_v9  ;;  %832 = vmatprep.subr.bf16.mxu0 %v954_v10  ;;  %v979_v32 = vld [vmem:[%s1217_s0 + $0x30] ss:$12 sps:$4 sm:$0xff]   ;;  %v980_v33 = vld [vmem:[%s1217_s0 + $0x38] ss:$12 sps:$4 sm:$0xff]   ;;  %v983_v35 = vld [vmem:[%s1217_s0 + $0x48] ss:$12 sps:$4 sm:$0xff]  }
   0xd   :  { %905 = vmatprep.subr.bf16.mxu1 %v997_v1  ;;  %v984_v36 = vld [vmem:[%s1217_s0 + $0x50] ss:$12 sps:$4 sm:$0xff]   ;;  %v988_v39 = vld [vmem:[%s1217_s0 + $0x68] ss:$12 sps:$4 sm:$0xff]   ;;  %v991_v41 = vld [vmem:[%s1217_s0 + $0x78] ss:$12 sps:$4 sm:$0xff]  }
   0xe   :  { %v985_v37 = vld [vmem:[%s1217_s0 + $0x64] ss:$12 sps:$4 sm:$0xff]   ;;  %v989_v40 = vld [vmem:[%s1217_s0 + $0x7c] ss:$12 sps:$4 sm:$0xff]   ;;  %v992_v42 = vld [vmem:[%s1217_s0 + $0x80] ss:$12 sps:$4 sm:$0xff]  }
   0xf   :  { %833 = vmatpush3.bf16.msra.mxu0 %v955_v11  ;;  %v993_v43 = vld [vmem:[%s1217_s0 + $0x94] ss:$12 sps:$4 sm:$0xff]   ;;  %v995_v44 = vld [vmem:[%s1217_s0 + $0x90] ss:$12 sps:$4 sm:$0xff]   ;;  %v996_v45 = vld [vmem:[%s1217_s0 + $0x98] ss:$12 sps:$4 sm:$0xff]  }
  0x10   :  { %906 = vmatpush3.bf16.msra.mxu1 %v956_v12  ;;  %834 = vmatprep.subr.bf16.mxu0 %v957_v13  ;;  %v1179_v52 = vld [vmem:[%s1218_s2] ss:$0 sm:$0xff] }
  0x11   :  { %907 = vmatprep.subr.bf16.mxu1 %v997_v1 }
  0x13   :  { %835 = vmatpush3.bf16.msra.mxu0 %v958_v14 }
  0x14   :  { %908 = vmatpush3.bf16.msra.mxu1 %v959_v15  ;;  %836 = vmatprep.subr.bf16.mxu0 %v960_v16 }
  0x15   :  { %909 = vmatprep.subr.bf16.mxu1 %v997_v1 }
  0x17   :  { %837 = vmatpush3.bf16.msra.mxu0 %v961_v17 }
  0x18   :  { %910 = vmatpush3.bf16.msra.mxu1 %v962_v18  ;;  %838 = vmatprep.subr.bf16.mxu0 %v963_v19 }
  0x19   :  { %911 = vmatprep.subr.bf16.mxu1 %v997_v1 }
  0x1b   :  { %839 = vmatpush3.bf16.msra.mxu0 %v964_v20 }
  0x1c   :  { %912 = vmatpush3.bf16.msra.mxu1 %v965_v21  ;;  %840 = vmatprep.subr.bf16.mxu0 %v966_v22 }
  0x1d   :  { %913 = vmatprep.subr.bf16.mxu1 %v997_v1 }
  0x1f   :  { %841 = vmatpush3.bf16.msra.mxu0 %v967_v24 }
  0x20   :  { %914 = vmatpush3.bf16.msra.mxu1 %v968_v25 }
  0x22   :  { %412 = vmatmul.mubr.bf16.vlgmr.msra.gmra.mrb[0].mxu0 %v969_v26 }
  0x23   :  { %916 = vmatmul.mubr.bf16.vlgmr.msra.gmra.mrb[0].mxu1 %v972_v27  ;;  %419 = vmatprep.mubr.bf16.mxu0 %v973_v28 }
  0x24   :  { %919 = vmatprep.mubr.msk.bf16.mxu1 %vm998_vm0, %v997_v1 }
  0x2a   :  { %420 = vmatmul.mubr.bf16.gmra.mrb[4].mxu0 %v975_v29 }
  0x2b   :  { %920 = vmatmul.mubr.bf16.gmra.mrb[4].mxu1 %v976_v30  ;;  %427 = vmatprep.mubr.bf16.mxu0 %v977_v31 }
  0x2c   :  { %923 = vmatprep.mubr.msk.bf16.mxu1 %vm998_vm0, %v997_v1 }
  0x32   :  { %428 = vmatmul.mubr.bf16.gmra.mrb[8].mxu0 %v979_v32 }
  0x33   :  { %924 = vmatmul.mubr.bf16.gmra.mrb[8].mxu1 %v980_v33  ;;  %435 = vmatprep.mubr.bf16.mxu0 %v981_v34 }
  0x34   :  { %927 = vmatprep.mubr.msk.bf16.mxu1 %vm998_vm0, %v997_v1 }
  0x3a   :  { %436 = vmatmul.mubr.bf16.gmra.mrb[12].mxu0 %v983_v35 }
  0x3b   :  { %928 = vmatmul.mubr.bf16.gmra.mrb[12].mxu1 %v984_v36  ;;  %443 = vmatprep.mubr.bf16.mxu0 %v985_v37 }
  0x3c   :  { %931 = vmatprep.mubr.msk.bf16.mxu1 %vm998_vm0, %v997_v1 }
  0x42   :  { %444 = vmatmul.mubr.bf16.gmra.mrb[16].mxu0 %v987_v38 }
  0x43   :  { %932 = vmatmul.mubr.bf16.gmra.mrb[16].mxu1 %v988_v39  ;;  %451 = vmatprep.mubr.bf16.mxu0 %v989_v40 }
  0x44   :  { %935 = vmatprep.mubr.msk.bf16.mxu1 %vm998_vm0, %v997_v1 }
  0x4a   :  { %452 = vmatmul.mubr.bf16.gmra.mrb[20].mxu0 %v991_v41 }
  0x4b   :  { %936 = vmatmul.mubr.bf16.gmra.mrb[20].mxu1 %v992_v42  ;;  %459 = vmatprep.mubr.bf16.mxu0 %v993_v43 }
  0x4c   :  { %939 = vmatprep.mubr.msk.bf16.mxu1 %vm998_vm0, %v997_v1 }
  0x52   :  { %460 = vmatmul.mubr.bf16.gmra.mrb[24].mxu0 %v995_v44 }
  0x53   :  { %940 = vmatmul.mubr.bf16.gmra.mrb[24].mxu1 %v996_v45 }
  0xf5   :  { %v842_v46 = vpop.f32.mrb[0].mxu0 }
  0xf6   :  { %v502_v47 = vpop.f32.mrb[0].mxu1  ;;  %v843_v48 = vpop.f32.mrb[1].mxu0 }
  0xf7   :  { %v844_v49 = vadd.f32 %v843_v48, %v842_v46  ;;  %v917_v50 = vpop.f32.mrb[1].mxu1  ;;  %v845_v51 = vpop.f32.mrb[2].mxu0 }
  0xf8   :  { %v505_v53 = vpop.f32.mrb[2].mxu1  ;;  %v846_v54 = vpop.f32.mrb[3].mxu0 }
  0xf9   :  { %v503_v55 = vadd.f32 %v844_v49, %v502_v47  ;;  %v847_v56 = vadd.f32 %v846_v54, %v845_v51  ;;  %v918_v57 = vpop.f32.mrb[3].mxu1 }
  0xfb   :  { %v609_v58 = vadd.f32 %v1179_v52, %v503_v55  ;;  %v506_v59 = vadd.f32 %v847_v56, %v505_v53 }
  0xfd   :  { %v610_v60 = vadd.f32 %v1179_v52, %v506_v59  ;;  %v848_v61 = vpop.f32.mrb[4].mxu0  ;;  %v623_v0 = vmax.f32 %v609_v58, 0.0 }
  0xfe   :  { %v510_v62 = vpop.f32.mrb[4].mxu1  ;;  %v849_v63 = vpop.f32.mrb[5].mxu0 }
  0xff   :  { %v624_v1 = vmax.f32 %v610_v60, 0.0  ;;  %v850_v2 = vadd.f32 %v849_v63, %v848_v61  ;;  %v921_v3 = vpop.f32.mrb[5].mxu1  ;;  %v851_v4 = vpop.f32.mrb[6].mxu0 }
 0x100   :  { %v513_v5 = vpop.f32.mrb[6].mxu1  ;;  %v852_v6 = vpop.f32.mrb[7].mxu0 }
 0x101   :  { %v788_v7 = vpack.c.bf16 %v624_v1, %v623_v0  ;;  %v511_v8 = vadd.f32 %v850_v2, %v510_v62  ;;  %v853_v9 = vadd.f32 %v852_v6, %v851_v4  ;;  %v922_v10 = vpop.f32.mrb[7].mxu1 }
 0x103   :  { %789 = vst [vmem:[%s1219_s3] sm:$0xff] %v788_v7   ;;  %v611_v11 = vadd.f32 %v1179_v52, %v511_v8  ;;  %v514_v12 = vadd.f32 %v853_v9, %v513_v5 }
 0x105   :  { %v612_v13 = vadd.f32 %v1179_v52, %v514_v12  ;;  %v854_v14 = vpop.f32.mrb[8].mxu0  ;;  %v625_v17 = vmax.f32 %v611_v11, 0.0 }
 0x106   :  { %v518_v15 = vpop.f32.mrb[8].mxu1  ;;  %v855_v16 = vpop.f32.mrb[9].mxu0 }
 0x107   :  { %v626_v18 = vmax.f32 %v612_v13, 0.0  ;;  %v856_v19 = vadd.f32 %v855_v16, %v854_v14  ;;  %v925_v20 = vpop.f32.mrb[9].mxu1  ;;  %v857_v21 = vpop.f32.mrb[10].mxu0 }
 0x108   :  { %v521_v22 = vpop.f32.mrb[10].mxu1  ;;  %v858_v23 = vpop.f32.mrb[11].mxu0 }
 0x109   :  { %v793_v24 = vpack.c.bf16 %v626_v18, %v625_v17  ;;  %v519_v25 = vadd.f32 %v856_v19, %v518_v15  ;;  %v859_v26 = vadd.f32 %v858_v23, %v857_v21  ;;  %v926_v27 = vpop.f32.mrb[11].mxu1 }
 0x10b   :  { %820 = vst [vmem:[%s1219_s3 + $0x8] sm:$0xff] %v793_v24   ;;  %v613_v28 = vadd.f32 %v1179_v52, %v519_v25  ;;  %v522_v29 = vadd.f32 %v859_v26, %v521_v22 }
 0x10d   :  { %v614_v30 = vadd.f32 %v1179_v52, %v522_v29  ;;  %v860_v31 = vpop.f32.mrb[12].mxu0  ;;  %v627_v34 = vmax.f32 %v613_v28, 0.0 }
 0x10e   :  { %v526_v32 = vpop.f32.mrb[12].mxu1  ;;  %v861_v33 = vpop.f32.mrb[13].mxu0 }
 0x10f   :  { %v628_v35 = vmax.f32 %v614_v30, 0.0  ;;  %v862_v36 = vadd.f32 %v861_v33, %v860_v31  ;;  %v929_v37 = vpop.f32.mrb[13].mxu1  ;;  %v863_v38 = vpop.f32.mrb[14].mxu0 }
 0x110   :  { %v529_v39 = vpop.f32.mrb[14].mxu1  ;;  %v864_v40 = vpop.f32.mrb[15].mxu0 }
 0x111   :  { %v798_v41 = vpack.c.bf16 %v628_v35, %v627_v34  ;;  %v527_v42 = vadd.f32 %v862_v36, %v526_v32  ;;  %v865_v43 = vadd.f32 %v864_v40, %v863_v38  ;;  %v930_v44 = vpop.f32.mrb[15].mxu1 }
 0x113   :  { %821 = vst [vmem:[%s1219_s3 + $0x10] sm:$0xff] %v798_v41   ;;  %v615_v45 = vadd.f32 %v1179_v52, %v527_v42  ;;  %v530_v46 = vadd.f32 %v865_v43, %v529_v39 }
 0x115   :  { %v616_v47 = vadd.f32 %v1179_v52, %v530_v46  ;;  %v866_v48 = vpop.f32.mrb[16].mxu0  ;;  %v629_v51 = vmax.f32 %v615_v45, 0.0 }
 0x116   :  { %v534_v49 = vpop.f32.mrb[16].mxu1  ;;  %v867_v50 = vpop.f32.mrb[17].mxu0 }
 0x117   :  { %v630_v53 = vmax.f32 %v616_v47, 0.0  ;;  %v868_v54 = vadd.f32 %v867_v50, %v866_v48  ;;  %v933_v55 = vpop.f32.mrb[17].mxu1  ;;  %v869_v56 = vpop.f32.mrb[18].mxu0 }
 0x118   :  { %v537_v57 = vpop.f32.mrb[18].mxu1  ;;  %v870_v58 = vpop.f32.mrb[19].mxu0 }
 0x119   :  { %v803_v59 = vpack.c.bf16 %v630_v53, %v629_v51  ;;  %v535_v60 = vadd.f32 %v868_v54, %v534_v49  ;;  %v871_v61 = vadd.f32 %v870_v58, %v869_v56  ;;  %v934_v62 = vpop.f32.mrb[19].mxu1 }
 0x11b   :  { %822 = vst [vmem:[%s1219_s3 + $0x18] sm:$0xff] %v803_v59   ;;  %v617_v63 = vadd.f32 %v1179_v52, %v535_v60  ;;  %v538_v0 = vadd.f32 %v871_v61, %v537_v57 }
 0x11d   :  { %v618_v1 = vadd.f32 %v1179_v52, %v538_v0  ;;  %v872_v2 = vpop.f32.mrb[20].mxu0  ;;  %v631_v5 = vmax.f32 %v617_v63, 0.0 }
 0x11e   :  { %v542_v3 = vpop.f32.mrb[20].mxu1  ;;  %v873_v4 = vpop.f32.mrb[21].mxu0 }
 0x11f   :  { %v632_v6 = vmax.f32 %v618_v1, 0.0  ;;  %v874_v7 = vadd.f32 %v873_v4, %v872_v2  ;;  %v937_v8 = vpop.f32.mrb[21].mxu1  ;;  %v875_v9 = vpop.f32.mrb[22].mxu0 }
 0x120   :  { %v545_v10 = vpop.f32.mrb[22].mxu1  ;;  %v876_v11 = vpop.f32.mrb[23].mxu0 }
 0x121   :  { %v808_v12 = vpack.c.bf16 %v632_v6, %v631_v5  ;;  %v543_v13 = vadd.f32 %v874_v7, %v542_v3  ;;  %v877_v14 = vadd.f32 %v876_v11, %v875_v9  ;;  %v938_v15 = vpop.f32.mrb[23].mxu1 }
 0x123   :  { %823 = vst [vmem:[%s1219_s3 + $0x20] sm:$0xff] %v808_v12   ;;  %v619_v16 = vadd.f32 %v1179_v52, %v543_v13  ;;  %v546_v17 = vadd.f32 %v877_v14, %v545_v10 }
 0x125   :  { %v620_v18 = vadd.f32 %v1179_v52, %v546_v17  ;;  %v878_v19 = vpop.f32.mrb[24].mxu0  ;;  %v633_v22 = vmax.f32 %v619_v16, 0.0 }
 0x126   :  { %v550_v20 = vpop.f32.mrb[24].mxu1  ;;  %v879_v21 = vpop.f32.mrb[25].mxu0 }
 0x127   :  { %v634_v23 = vmax.f32 %v620_v18, 0.0  ;;  %v880_v24 = vadd.f32 %v879_v21, %v878_v19  ;;  %v941_v25 = vpop.f32.mrb[25].mxu1  ;;  %v881_v26 = vpop.f32.mrb[26].mxu0 }
 0x128   :  { %v553_v27 = vpop.f32.mrb[26].mxu1  ;;  %v882_v28 = vpop.f32.mrb[27].mxu0 }
 0x129   :  { %v813_v29 = vpack.c.bf16 %v634_v23, %v633_v22  ;;  %v551_v30 = vadd.f32 %v880_v24, %v550_v20  ;;  %v883_v31 = vadd.f32 %v882_v28, %v881_v26  ;;  %v942_v32 = vpop.f32.mrb[27].mxu1 }
 0x12b   :  { %824 = vst [vmem:[%s1219_s3 + $0x28] sm:$0xff] %v813_v29   ;;  %v621_v33 = vadd.f32 %v1179_v52, %v551_v30  ;;  %v554_v34 = vadd.f32 %v883_v31, %v553_v27 }
 0x12d   :  { %v622_v35 = vadd.f32 %v1179_v52, %v554_v34  ;;  %v635_v36 = vmax.f32 %v621_v33, 0.0 }
 0x12f   :  { %v636_v37 = vmax.f32 %v622_v35, 0.0 }
 0x131   :  { %v818_v38 = vpack.c.bf16 %v636_v37, %v635_v36 }
 0x133   :  { %825 = vst [vmem:[%s1219_s3 + $0x30] sm:$0xff] %v818_v38  }

// kernel: simple_cnn_forward.11
= control target key start
LH: loop header
LB: loop body
LE: loop exit
PB: predicated region body
PF: predicated region fallthrough
CT: control target
= control target key end

     0   :  { %v210_v0 = vmov 0.0   ;;  %vm211_vm0 = vmmov 0   ;;  %s268_s1 = inlined_call_operand.vmem [shape: bf16[128,128], index: 1, kind: input, shape index: {}]   ;;  %s269_s0 = inlined_call_operand.vmem [shape: bf16[16,128], index: 0, kind: input, shape index: {}]   ;;  %s270_s2 = inlined_call_operand.vmem [shape: f32[1,128], index: 2, kind: input, shape index: {}]   ;;  %s271_s3 = inlined_call_operand.vmem [shape: f32[16,128], index: 3, kind: output, shape index: {}]  }
   0x1   :  { %179 = vmatprep.subr.bf16.mxu0 %v210_v0  ;;  %v201_v1 = vld [vmem:[%s268_s1] sm:$0xff]   ;;  %195 = vmatprep.mubr.msk.bf16.mxu0 %vm211_vm0, %v210_v0  ;;  %v202_v2 = vld [vmem:[%s268_s1 + $0x8] sm:$0xff]   ;;  %v203_v3 = vld [vmem:[%s268_s1 + $0x10] sm:$0xff]  }
   0x2   :  { %180 = vmatpush3.bf16.msra.mxu0 %v201_v1  ;;  %v204_v4 = vld [vmem:[%s268_s1 + $0x18] sm:$0xff]   ;;  %v205_v5 = vld [vmem:[%s268_s1 + $0x20] sm:$0xff]   ;;  %v206_v6 = vld [vmem:[%s268_s1 + $0x28] sm:$0xff]  }
   0x3   :  { %181 = vmatprep.subr.bf16.mxu0 %v210_v0  ;;  %v207_v7 = vld [vmem:[%s268_s1 + $0x30] sm:$0xff]   ;;  %v208_v8 = vld [vmem:[%s268_s1 + $0x38] sm:$0xff]   ;;  %v209_v9 = vld [vmem:[%s269_s0] sm:$0xff]  }
   0x4   :  { %v169_v10 = vld [vmem:[%s270_s2] ss:$0 sm:$0xff] }
   0x6   :  { %182 = vmatpush3.bf16.msra.mxu0 %v202_v2 }
   0x7   :  { %183 = vmatprep.subr.bf16.mxu0 %v210_v0 }
   0xa   :  { %184 = vmatpush3.bf16.msra.mxu0 %v203_v3 }
   0xb   :  { %185 = vmatprep.subr.bf16.mxu0 %v210_v0 }
   0xe   :  { %186 = vmatpush3.bf16.msra.mxu0 %v204_v4 }
   0xf   :  { %187 = vmatprep.subr.bf16.mxu0 %v210_v0 }
  0x12   :  { %188 = vmatpush3.bf16.msra.mxu0 %v205_v5 }
  0x13   :  { %189 = vmatprep.subr.bf16.mxu0 %v210_v0 }
  0x16   :  { %190 = vmatpush3.bf16.msra.mxu0 %v206_v6 }
  0x17   :  { %191 = vmatprep.subr.bf16.mxu0 %v210_v0 }
  0x1a   :  { %192 = vmatpush3.bf16.msra.mxu0 %v207_v7 }
  0x1b   :  { %193 = vmatprep.subr.bf16.mxu0 %v210_v0 }
  0x1e   :  { %194 = vmatpush3.bf16.msra.mxu0 %v208_v8 }
  0x21   :  { %196 = vmatmul.mubr.bf16.vlgmr.msra.gmra.mrb[0].mxu0 %v209_v9 }
  0xf4   :  { %v129_v11 = vpop.f32.mrb[0].mxu0 }
  0xf5   :  { %v152_v12 = vadd.f32 %v169_v10, %v129_v11  ;;  %v197_v13 = vpop.f32.mrb[1].mxu0 }
  0xf6   :  { %v132_v14 = vpop.f32.mrb[2].mxu0 }
  0xf7   :  { %154 = vst [vmem:[%s271_s3] sm:$0xff] %v152_v12  ;;  %v153_v15 = vadd.f32 %v169_v10, %v132_v14  ;;  %v198_v16 = vpop.f32.mrb[3].mxu0 }
  0xf9   :  { %155 = vst [vmem:[%s271_s3 + $0x8] sm:$0xff] %v153_v15 }

// kernel: simple_cnn_forward.10
= control target key start
LH: loop header
LB: loop body
LE: loop exit
PB: predicated region body
PF: predicated region fallthrough
CT: control target
= control target key end

     0   :  { %s1154_s12 = smov 0   ;;  %s1156_s13 = smov 0   ;;  %s1276_s0 = inlined_call_operand.vmem [shape: bf16[16,3200], index: 0, kind: input, shape index: {}]   ;;  %s1277_s1 = inlined_call_operand.vmem [shape: bf16[3200,128], index: 1, kind: input, shape index: {}]   ;;  %s1278_s2 = inlined_call_operand.vmem [shape: f32[1,128], index: 2, kind: input, shape index: {}]   ;;  %s1279_s3 = inlined_call_operand.vmem [shape: bf16[16,128], index: 3, kind: output, shape index: {}]  }
   0x1   :  { %s1158_s14 = smov 0   ;;  %s1160_s15 = smov 0  }
   0x2   :  { %s1162_s16 = smov 0  }
   0x3 LB: > { %s22_s17 = sadd.s32 1, %s1125_s15  ;;  %p41_p1 = scmp.ne.s32.totalorder %s1117_s13, %s1113_s12  ;;  %s1129_s16 = sphi %s1162_s16, %s13_s16   ;;  %s1125_s15 = sphi %s1160_s15, %s1283_s15   ;;  %s1121_s14 = sphi %s1158_s14, %s1282_s14   ;;  %s1117_s13 = sphi %s1156_s13, %s1281_s13   ;;  %s1113_s12 = sphi %s1154_s12, %s1280_s12  }
   0x4   : > { %p23_p0 = scmp.ge.s32.totalorder %s22_s17, 5  ;;  %p42_p2 = scmp.eq.s32.totalorder %s1129_s16, 0 }
   0x5   : > { %s34_s19 = sadd.s32 1, %s1117_s13  ;;  %p856_p5 = scmp.ge.s32.totalorder %s1129_s16, 5 }
   0x6   : > { %s1285_s17 = smov (%p23_p0, %s22_s17), 0  ;;  %p43_p3 = por %p42_p2, %p41_p1 }
   0x7   : > { %s30_s18 = ssub.s32 %s1125_s15, %s1285_s17  ;;  %143 = sbr.rel (%p856_p5) target bundleno = 22 (0x16), region = 20 }
   0x8   : > { %p32_p4 = scmp.eq.s32.totalorder %s30_s18, 0 }
   0xa   : > { %s1189_s20 = scalar_select %p32_p4, %s1117_s13, %s34_s19  }
   0xe   : > { %146 = sbr.rel (!%p43_p3) target bundleno = 22 (0x16), region = 24  ;;  %s148_s21 = sand.u32 (%p43_p3), 1, %s1117_s13  }
   0xf   : > { %s918_s22 = smul.u32 (%p43_p3), 20, %s1125_s15 }
  0x10   : > { %s999_s23 = smul.u32 (%p43_p3), 40, %s148_s21 }
  0x11   : > { %s156_s26 = scalar_lea.vmem (%p43_p3), %s1276_s0, %s918_s22 }
  0x12   : > { %v171_v0 = vld [vmem:[%s156_s26] sm:$0xff] (%p43_p3)  ;;  %v173_v1 = vld [vmem:[%s156_s26 + $0x8] sm:$0xff] (%p43_p3)  ;;  %s150_s27 = scalar_lea.vmem (%p43_p3), [#allocation3], %s999_s23  ;;  %v858_v4 = vld [vmem:[%s156_s26 + $0x10] sm:$0xf] (%p43_p3) }
  0x13   : > { %v175_v2 = vld [vmem:[%s156_s26 + $0x64] sm:$0xff] (%p43_p3)  ;;  %172 = vst [vmem:[%s150_s27] sm:$0xff] (%p43_p3), %v171_v0  ;;  %174 = vst [vmem:[%s150_s27 + $0x8] sm:$0xff] (%p43_p3), %v173_v1  ;;  %v177_v3 = vld [vmem:[%s156_s26 + $0x6c] sm:$0xff] (%p43_p3) }
  0x14   : > { %176 = vst [vmem:[%s150_s27 + $0x14] sm:$0xff] (%p43_p3), %v175_v2  ;;  %v860_v5 = vld [vmem:[%s156_s26 + $0x74] sm:$0xf] (%p43_p3)  ;;  %178 = vst [vmem:[%s150_s27 + $0x1c] sm:$0xff] (%p43_p3), %v177_v3 }
  0x15   : > { %859 = vst [vmem:[%s150_s27 + $0x10] sm:$0xf] %v858_v4  ;;  %861 = vst [vmem:[%s150_s27 + $0x24] sm:$0xf] %v860_v5 }
  0x16 PF: > { %p862_p6 = scmp.ge.s32.totalorder %s1129_s16, 1  ;;  %p203_p7 = scmp.lt.s32.totalorder %s1129_s16, 6 }
  0x18   : > { %p204_p8 = pnand %p862_p6, %p203_p7 }
  0x19   : > { %s210_s28 = sand.u32 (!%p204_p8), 1, %s1113_s12   ;;  %s240_s29 = smul.u32 (!%p204_p8), 80, %s1121_s14 }
  0x1a   : > { %207 = sbr.rel (%p204_p8) target bundleno = 339 (0x153), region = 54  ;;  %p864_p10 = scmp.ne.s32.totalorder (!%p204_p8), %s1121_s14, 0 }
  0x1b   : > { %s1000_s30 = smul.u32 (!%p204_p8), 40, %s210_s28  ;;  %p241_p9 = scmp.lt.s32.totalorder (!%p204_p8), %s240_s29, 399 }
  0x1d   : > { %s1206_s8 = scalar_lea.vmem (!%p204_p8), [#allocation3], %s1000_s30 }
  0x21   : > { %s1287_s29 = smov (!%p241_p9, %s240_s29), 399  ;;  %256 = sbr.rel (%p864_p10) target bundleno = 40 (0x28), region = 62 }
  0x22   : > { %s863_s4 = sshll.u32 %s1287_s29, 2  ;;  %v1131_v6 = vmov (!%p864_p10), 0.0  }
  0x23   : > { %s1204_s7 = scalar_lea.vmem %s1277_s1, %s863_s4  ;;  %257 = vst [vmem:[#allocation2] sm:$0xff] (!%p864_p10), %v1131_v6  ;;  %258 = vst [vmem:[#allocation2 + $0x8] sm:$0xff] (!%p864_p10), %v1131_v6 }
  0x28 PF: > { %v1044_v7 = vld [vmem:[%s1204_s7 + $0x40] sm:$0xff]   ;;  %v1048_v11 = vld [vmem:[%s1204_s7 + $0x48] sm:$0xff]   ;;  %v1052_v15 = vld [vmem:[%s1204_s7 + $0x50] sm:$0xff]   ;;  %v1132_v41 = vmov 0.0   ;;  %vm1133_vm0 = vmmov 0   ;;  %p910_p11 = scmp.ne.s32.totalorder %s1121_s14, 4 }
  0x29   : > { %v1045_v8 = vld [vmem:[%s1204_s7 + $0xc0] sm:$0xff]   ;;  %926 = vmatprep.subr.bf16.mxu0 %v1044_v7  ;;  %v1049_v12 = vld [vmem:[%s1204_s7 + $0xc8] sm:$0xff]   ;;  %v1053_v16 = vld [vmem:[%s1204_s7 + $0xd0] sm:$0xff]  }
  0x2a   : > { %v1046_v9 = vld [vmem:[%s1204_s7] sm:$0xff]   ;;  %948 = vmatprep.subr.bf16.mxu1 %v1045_v8  ;;  %v1050_v13 = vld [vmem:[%s1204_s7 + $0x8] sm:$0xff]   ;;  %v1054_v17 = vld [vmem:[%s1204_s7 + $0x10] sm:$0xff]  }
  0x2b   : > { %v1047_v10 = vld [vmem:[%s1204_s7 + $0x80] sm:$0xff]   ;;  %927 = vmatpush3.bf16.msra.mxu0 %v1046_v9  ;;  %v1051_v14 = vld [vmem:[%s1204_s7 + $0x88] sm:$0xff]   ;;  %v1055_v18 = vld [vmem:[%s1204_s7 + $0x90] sm:$0xff]  }
  0x2c   : > { %949 = vmatpush3.bf16.msra.mxu1 %v1047_v10  ;;  %928 = vmatprep.subr.bf16.mxu0 %v1048_v11  ;;  %v1056_v19 = vld [vmem:[%s1204_s7 + $0x58] sm:$0xff]   ;;  %v1060_v23 = vld [vmem:[%s1204_s7 + $0x60] sm:$0xff]   ;;  %v1064_v27 = vld [vmem:[%s1204_s7 + $0x68] sm:$0xff]  }
  0x2d   : > { %950 = vmatprep.subr.bf16.mxu1 %v1049_v12  ;;  %v1057_v20 = vld [vmem:[%s1204_s7 + $0xd8] sm:$0xff]   ;;  %v1061_v24 = vld [vmem:[%s1204_s7 + $0xe0] sm:$0xff]   ;;  %v1065_v28 = vld [vmem:[%s1204_s7 + $0xe8] sm:$0xff]  }
  0x2e   : > { %v1058_v21 = vld [vmem:[%s1204_s7 + $0x18] sm:$0xff]   ;;  %v1062_v25 = vld [vmem:[%s1204_s7 + $0x20] sm:$0xff]   ;;  %v1066_v29 = vld [vmem:[%s1204_s7 + $0x28] sm:$0xff]  }
  0x2f   : > { %929 = vmatpush3.bf16.msra.mxu0 %v1050_v13  ;;  %v1059_v22 = vld [vmem:[%s1204_s7 + $0x98] sm:$0xff]   ;;  %v1063_v26 = vld [vmem:[%s1204_s7 + $0xa0] sm:$0xff]   ;;  %v1067_v30 = vld [vmem:[%s1204_s7 + $0xa8] sm:$0xff]  }
  0x30   : > { %951 = vmatpush3.bf16.msra.mxu1 %v1051_v14  ;;  %930 = vmatprep.subr.bf16.mxu0 %v1052_v15  ;;  %v1068_v31 = vld [vmem:[%s1204_s7 + $0x70] sm:$0xff]   ;;  %v1072_v35 = vld [vmem:[%s1204_s7 + $0x78] sm:$0xff]   ;;  %v1082_v44 = vld [vmem:[%s1204_s7 + $0x100] sm:$0xff]  }
  0x31   : > { %952 = vmatprep.subr.bf16.mxu1 %v1053_v16  ;;  %v1069_v32 = vld [vmem:[%s1204_s7 + $0xf0] sm:$0xff]   ;;  %v1073_v36 = vld [vmem:[%s1204_s7 + $0xf8] sm:$0xff]   ;;  %v1083_v45 = vld [vmem:[%s1204_s7 + $0x108] sm:$0xff]  }
  0x32   : > { %v1070_v33 = vld [vmem:[%s1204_s7 + $0x30] sm:$0xff]   ;;  %v1074_v37 = vld [vmem:[%s1204_s7 + $0x38] sm:$0xff]   ;;  %v1086_v48 = vld [vmem:[%s1204_s7 + $0x120] sm:$0xff]  }
  0x33   : > { %931 = vmatpush3.bf16.msra.mxu0 %v1054_v17  ;;  %v1071_v34 = vld [vmem:[%s1204_s7 + $0xb0] sm:$0xff]   ;;  %v1075_v38 = vld [vmem:[%s1204_s7 + $0xb8] sm:$0xff]   ;;  %v1087_v49 = vld [vmem:[%s1204_s7 + $0x128] sm:$0xff]  }
  0x34   : > { %953 = vmatpush3.bf16.msra.mxu1 %v1055_v18  ;;  %932 = vmatprep.subr.bf16.mxu0 %v1056_v19  ;;  %v1076_v39 = vld [vmem:[%s1206_s8] ss:$20 sps:$4 sm:$0xff]   ;;  %v1078_v40 = vld [vmem:[%s1206_s8 + $0x4] ss:$20 sps:$4 sm:$0xff]   ;;  %v1079_v42 = vld [vmem:[%s1206_s8 + $0x8] ss:$20 sps:$4 sm:$0xff]  }
  0x35   : > { %954 = vmatprep.subr.bf16.mxu1 %v1057_v20  ;;  %v1081_v43 = vld [vmem:[%s1206_s8 + $0xc] ss:$20 sps:$4 sm:$0xff]   ;;  %645 = vmatprep.mubr.bf16.mxu0 %v1078_v40  ;;  %v1090_v52 = vld [vmem:[%s1206_s8 + $0x10] ss:$20 sps:$4 sm:$0xff]  }
  0x36   : > { %686 = vmatprep.mubr.bf16.mxu1 %v1081_v43  ;;  %v1084_v46 = vld [vmem:[%s1204_s7 + $0x110] sm:$0xff]   ;;  %v1085_v47 = vld [vmem:[%s1204_s7 + $0x118] sm:$0xff]   ;;  %v259_v3 = vld [vmem:[#allocation2] sm:$0xff] }
  0x37   : > { %933 = vmatpush3.bf16.msra.mxu0 %v1058_v21  ;;  %v1088_v50 = vld [vmem:[%s1204_s7 + $0x130] sm:$0xff]   ;;  %v1089_v51 = vld [vmem:[%s1204_s7 + $0x138] sm:$0xff]   ;;  %v260_v7 = vld [vmem:[#allocation2 + $0x8] sm:$0xff] }
  0x38   : > { %955 = vmatpush3.bf16.msra.mxu1 %v1059_v22  ;;  %934 = vmatprep.subr.bf16.mxu0 %v1060_v23  ;;  %v911_v15 = vld [vmem:[%s1278_s2] ss:$0 sm:$0xff] (!%p910_p11) }
  0x39   : > { %956 = vmatprep.subr.bf16.mxu1 %v1061_v24 }
  0x3b   : > { %935 = vmatpush3.bf16.msra.mxu0 %v1062_v25 }
  0x3c   : > { %957 = vmatpush3.bf16.msra.mxu1 %v1063_v26  ;;  %936 = vmatprep.subr.bf16.mxu0 %v1064_v27 }
  0x3d   : > { %958 = vmatprep.subr.bf16.mxu1 %v1065_v28 }
  0x3f   : > { %937 = vmatpush3.bf16.msra.mxu0 %v1066_v29 }
  0x40   : > { %959 = vmatpush3.bf16.msra.mxu1 %v1067_v30  ;;  %938 = vmatprep.subr.bf16.mxu0 %v1068_v31 }
  0x41   : > { %960 = vmatprep.subr.bf16.mxu1 %v1069_v32 }
  0x43   : > { %939 = vmatpush3.bf16.msra.mxu0 %v1070_v33 }
  0x44   : > { %961 = vmatpush3.bf16.msra.mxu1 %v1071_v34  ;;  %940 = vmatprep.subr.bf16.mxu0 %v1072_v35 }
  0x45   : > { %962 = vmatprep.subr.bf16.mxu1 %v1073_v36 }
  0x47   : > { %941 = vmatpush3.bf16.msra.mxu0 %v1074_v37 }
  0x48   : > { %963 = vmatpush3.bf16.msra.mxu1 %v1075_v38  ;;  %979 = vmatprep.subr.bf16.mxu0 %v1132_v41 }
  0x4a   : > { %646 = vmatmul.mubr.bf16.vlgmr.msra.gmra.mrb[0].mxu0 %v1076_v39 }
  0x4b   : > { %687 = vmatmul.mubr.bf16.vlgmr.msra.gmra.mrb[0].mxu1 %v1079_v42  ;;  %980 = vmatpush3.bf16.msra.mxu0 %v1082_v44 }
  0x4c   : > { %981 = vmatprep.subr.bf16.mxu0 %v1132_v41  ;;  %995 = vmatprep.mubr.msk.bf16.mxu0 %vm1133_vm0, %v1132_v41 }
  0x4f   : > { %982 = vmatpush3.bf16.msra.mxu0 %v1083_v45 }
  0x50   : > { %983 = vmatprep.subr.bf16.mxu0 %v1132_v41 }
  0x53   : > { %984 = vmatpush3.bf16.msra.mxu0 %v1084_v46 }
  0x54   : > { %985 = vmatprep.subr.bf16.mxu0 %v1132_v41 }
  0x57   : > { %986 = vmatpush3.bf16.msra.mxu0 %v1085_v47 }
  0x58   : > { %987 = vmatprep.subr.bf16.mxu0 %v1132_v41 }
  0x5b   : > { %988 = vmatpush3.bf16.msra.mxu0 %v1086_v48 }
  0x5c   : > { %989 = vmatprep.subr.bf16.mxu0 %v1132_v41 }
  0x5f   : > { %990 = vmatpush3.bf16.msra.mxu0 %v1087_v49 }
  0x60   : > { %991 = vmatprep.subr.bf16.mxu0 %v1132_v41 }
  0x63   : > { %992 = vmatpush3.bf16.msra.mxu0 %v1088_v50 }
  0x64   : > { %993 = vmatprep.subr.bf16.mxu0 %v1132_v41 }
  0x67   : > { %994 = vmatpush3.bf16.msra.mxu0 %v1089_v51 }
  0x6a   : > { %996 = vmatmul.mubr.bf16.vlgmr.msra.gmra.mrb[4].mxu0 %v1090_v52 }
 0x11d   : > { %v942_v53 = vpop.f32.mrb[0].mxu0 }
 0x11e   : > { %v964_v54 = vpop.f32.mrb[0].mxu1  ;;  %v943_v55 = vpop.f32.mrb[1].mxu0 }
 0x11f   : > { %v944_v56 = vadd.f32 %v943_v55, %v942_v53  ;;  %v965_v57 = vpop.f32.mrb[1].mxu1  ;;  %v945_v58 = vpop.f32.mrb[2].mxu0 }
 0x120   : > { %v966_v59 = vadd.f32 %v965_v57, %v964_v54  ;;  %v967_v60 = vpop.f32.mrb[2].mxu1  ;;  %v946_v61 = vpop.f32.mrb[3].mxu0 }
 0x121   : > { %v947_v62 = vadd.f32 %v946_v61, %v945_v58  ;;  %v968_v63 = vpop.f32.mrb[3].mxu1 }
 0x122   : > { %v969_v0 = vadd.f32 %v968_v63, %v967_v60  ;;  %v689_v1 = vadd.f32 %v966_v59, %v944_v56 }
 0x124   : > { %v692_v2 = vadd.f32 %v969_v0, %v947_v62 }
 0x13d   : > { %v729_v4 = vpop.f32.mrb[4].mxu0 }
 0x13e   : > { %v730_v5 = vadd.f32 %v729_v4, %v689_v1  ;;  %v997_v6 = vpop.f32.mrb[5].mxu0  ;;  %743 = sbr.rel (%p910_p11) target bundleno = 339 (0x153), region = 66 }
 0x13f   : > { %v732_v8 = vpop.f32.mrb[6].mxu0 }
 0x140   : > { %v736_v9 = vadd.f32 %v730_v5, %v259_v3  ;;  %v733_v10 = vadd.f32 %v732_v8, %v692_v2  ;;  %v998_v11 = vpop.f32.mrb[7].mxu0 }
 0x142   : > { %738 = vst [vmem:[#allocation2] sm:$0xff] %v736_v9  ;;  %v737_v12 = vadd.f32 %v733_v10, %v260_v7 }
 0x144   : > { %739 = vst [vmem:[#allocation2 + $0x8] sm:$0xff] %v737_v12 }
 0x149   : > { %v744_v13 = vld [vmem:[#allocation2] sm:$0xff] }
 0x14a   : > { %v753_v16 = vadd.f32 %v911_v15, %v744_v13 }
 0x14b   : > { %v745_v14 = vld [vmem:[#allocation2 + $0x8] sm:$0xff] }
 0x14c   : > { %v754_v17 = vadd.f32 %v911_v15, %v745_v14  ;;  %v755_v18 = vmax.f32 %v753_v16, 0.0 }
 0x14e   : > { %v756_v19 = vmax.f32 %v754_v17, 0.0 }
 0x150   : > { %v924_v20 = vpack.c.bf16 %v756_v19, %v755_v18 }
 0x152   : > { %925 = vst [vmem:[%s1279_s3] sm:$0xff] %v924_v20  }
 0x153 PF: > { %s13_s16 = sadd.s32 1, %s1129_s16   ;;  %s1280_s12 = smov %s1117_s13 }
 0x154   : > { %p10_p12 = scmp.ge.s32.totalorder %s13_s16, 7   ;;  %s1281_s13 = smov %s1189_s20 }
 0x155   : > { %s1282_s14 = smov %s1125_s15  ;;  %s1283_s15 = smov %s1285_s17 }
 0x156   :  { %12 = sbr.rel (!%p10_p12) target bundleno = 3 (0x3), region = 110 }

</bundles_post_ra>
